<compile_context>
chip_gen: v5e
topology: v5e:2x2
jax: 0.10.0
libtpu: 0.0.40
codegen_flags: <defaults>
</compile_context>

<pallas_src>
import functools
import math

import jax
import jax.numpy as jnp
from jax.experimental import pallas as pl
from jax.experimental.pallas import tpu as pltpu


def _self_attn_kernel(x_ref, gamma_ref, beta_ref, w_ref, b_ref, o_ref, *,
                      scale, eps, n_heads, hidden_dim):
    bB, V, C = x_ref.shape
    inner = n_heads * hidden_dim

    # ---- LayerNorm over C, computed ONCE for all heads ---------------------
    # (bB, V, C) -> (bB*V, C): leading-dim collapse, layout-preserving when V
    # is a multiple of the 8-row sublane tile (V = 16 here).
    x = x_ref[...].astype(jnp.float32).reshape(bB * V, C)
    mean = jnp.mean(x, axis=-1, keepdims=True)
    var = jnp.mean((x - mean) ** 2, axis=-1, keepdims=True)
    xn = (x - mean) * jax.lax.rsqrt(var + eps)
    xn = xn * gamma_ref[...] + beta_ref[...]                      # (bB*V, C)

    # ---- Single fused projection for q and k of ALL heads ------------------
    y = jnp.dot(xn, w_ref[...], preferred_element_type=jnp.float32)
    y = y + b_ref[...]                                            # (bB*V, 2*inner)

    q = y[:, :inner] * scale      # fold scale into q: V*D elems, not V*V logits
    k = y[:, inner:]

    # ---- Per-head attention logits + softmax (small static unroll over H) --
    for h in range(n_heads):
        qh = q[:, h * hidden_dim:(h + 1) * hidden_dim].reshape(bB, V, hidden_dim)
        kh = k[:, h * hidden_dim:(h + 1) * hidden_dim].reshape(bB, V, hidden_dim)
        # Batched contraction on the last dim of both operands -> no transpose.
        dots = jnp.einsum('bid,bjd->bij', qh, kh,
                          preferred_element_type=jnp.float32)     # (bB, V, V)
        m = jnp.max(dots, axis=-1, keepdims=True)
        e = jnp.exp(dots - m)
        s = jnp.sum(e, axis=-1, keepdims=True)
        attn = e * pl.reciprocal(s, approx=True)    # EUP slot; frees VALU
        o_ref[:, h, :, :] = attn


def _rows_per_step(B, V, target_rows=128):
    """Batch rows per grid step: aim for >= target_rows MXU rows per step, but
    keep at least 2 grid steps when possible so v7x's two TensorCores share
    the (parallel) grid axis."""
    bB = max(1, min(B, pl.cdiv(target_rows, V)))
    if B > 1 and pl.cdiv(B, bB) < 2:
        bB = pl.cdiv(B, 2)
    return bB


def self_attention(x, ln_gamma, ln_beta, w_qk, b_qk, *, hidden_dim, n_heads,
                   eps=1e-5, target_rows=128):
    """x: (n, c, t, v) NCTV.  Returns attn of shape (n*t, n_heads, v, v) f32."""
    n, c, t, v = x.shape
    inner = hidden_dim * n_heads
    B = n * t

    # Layout plumbing in plain JAX.
    xb = jnp.transpose(x, (0, 2, 3, 1)).reshape(B, v, c)          # (B, V, C)

    # Fused projection weight/bias for q and k of all heads.
    w_all = jnp.transpose(w_qk, (1, 0))                           # (C, 2*inner)
    b_all = b_qk.reshape(1, 2 * inner)
    gamma = ln_gamma.reshape(1, c)
    beta = ln_beta.reshape(1, c)

    bB = _rows_per_step(B, v, target_rows)
    n_steps = pl.cdiv(B, bB)
    B_pad = bB * n_steps
    if B_pad != B:
        xb = jnp.pad(xb, ((0, B_pad - B), (0, 0), (0, 0)))

    scale = float(hidden_dim) ** (-0.5)
    kernel = functools.partial(_self_attn_kernel, scale=scale, eps=eps,
                               n_heads=n_heads, hidden_dim=hidden_dim)

    out = pl.pallas_call(
        kernel,
        out_shape=jax.ShapeDtypeStruct((B_pad, n_heads, v, v), jnp.float32),
        grid_spec=pltpu.PrefetchScalarGridSpec(
            num_scalar_prefetch=0,
            grid=(n_steps,),
            in_specs=[
                pl.BlockSpec((bB, v, c), lambda i: (i, 0, 0)),         # x rows
                pl.BlockSpec((1, c), lambda i: (0, 0)),                # ln gamma
                pl.BlockSpec((1, c), lambda i: (0, 0)),                # ln beta
                pl.BlockSpec((c, 2 * inner), lambda i: (0, 0)),        # W = [Wq|Wk]
                pl.BlockSpec((1, 2 * inner), lambda i: (0, 0)),        # bias
            ],
            out_specs=pl.BlockSpec((bB, n_heads, v, v),
                                   lambda i: (i, 0, 0, 0)),
        ),
        compiler_params=pltpu.CompilerParams(
            dimension_semantics=("parallel",)),
    )(xb, gamma, beta, w_all, b_all)

    return out[:B] if B_pad != B else out


def _reference(x, ln_gamma, ln_beta, w_qk, b_qk, *, hidden_dim, n_heads,
               eps=1e-5):
    n, c, t, v = x.shape
    inner = hidden_dim * n_heads
    y = jnp.transpose(x, (0, 2, 3, 1)).astype(jnp.float32)        # (n, t, v, c)
    mean = jnp.mean(y, axis=-1, keepdims=True)
    var = jnp.mean((y - mean) ** 2, axis=-1, keepdims=True)
    y = (y - mean) / jnp.sqrt(var + eps) * ln_gamma + ln_beta
    y = y @ w_qk.T + b_qk                                         # (n, t, v, 2*inner)
    q, k = y[..., :inner], y[..., inner:]
    def split_heads(tens):
        return tens.reshape(n * t, v, n_heads, hidden_dim).transpose(0, 2, 1, 3)
    q, k = split_heads(q), split_heads(k)
    dots = jnp.einsum('bhid,bhjd->bhij', q, k) * (hidden_dim ** -0.5)
    return jax.nn.softmax(dots, axis=-1).astype(jnp.float32)


if __name__ == "__main__":
    # Small shapes consistent with the module: x is (n, c, t, v).
    n, c, t, v = 2, 4, 8, 16
    hidden_dim, n_heads = 8, 2
    inner = hidden_dim * n_heads

    key = jax.random.PRNGKey(0)
    kx, kw, kb = jax.random.split(key, 3)

    x = jax.random.normal(kx, (n, c, t, v), dtype=jnp.float32)

    # Parameters matching the PyTorch __init__ semantics:
    #   to_qk.weight ~ N(0, 1), shape (2*inner, c)
    #   to_qk.bias   ~ U(-1/sqrt(c), 1/sqrt(c))  (nn.Linear default)
    #   ln.weight = 1, ln.bias = 0               (nn.LayerNorm default)
    w_qk = jax.random.normal(kw, (2 * inner, c), dtype=jnp.float32)
    bound = 1.0 / math.sqrt(c)
    b_qk = jax.random.uniform(kb, (2 * inner,), minval=-bound, maxval=bound,
                              dtype=jnp.float32)
    ln_gamma = jnp.ones((c,), dtype=jnp.float32)
    ln_beta = jnp.zeros((c,), dtype=jnp.float32)

    attn = self_attention(x, ln_gamma, ln_beta, w_qk, b_qk,
                          hidden_dim=hidden_dim, n_heads=n_heads)
    attn = jax.block_until_ready(attn)

    ref = _reference(x, ln_gamma, ln_beta, w_qk, b_qk,
                     hidden_dim=hidden_dim, n_heads=n_heads)
    assert attn.shape == (n * t, n_heads, v, v), attn.shape
    assert attn.dtype == jnp.float32
    # Tolerance 2e-3: the softmax denominator uses the approximate EUP
    # reciprocal (pl.reciprocal(approx=True)), worth ~1e-4-level error on
    # values in [0, 1].
    assert jnp.allclose(attn, ref, atol=2e-3, rtol=2e-3)

    print("KERNEL_OK")
</pallas_src>

<mosaic_0001>
module attributes {stable_mosaic.version = 11 : i64} {
  func.func @_self_attn_kernel(%arg0: i32, %arg1: memref<8x16x4xf32, #tpu.memory_space<vmem>>, %arg2: memref<1x4xf32, #tpu.memory_space<vmem>>, %arg3: memref<1x4xf32, #tpu.memory_space<vmem>>, %arg4: memref<4x32xf32, #tpu.memory_space<vmem>>, %arg5: memref<1x32xf32, #tpu.memory_space<vmem>>, %arg6: memref<8x2x16x16xf32, #tpu.memory_space<vmem>>) attributes {dimension_semantics = [#tpu.dimension_semantics<parallel>], iteration_bounds = array<i64: 2>, scalar_prefetch = 0 : i64, scratch_operands = 0 : i64, tpu.core_type = #tpu.core_type<tc>, window_params = [{transform_indices = @transform_0, window_bounds = array<i64: 8, 16, 4>}, {pipeline_mode = #tpu.pipeline_mode<synchronous>, transform_indices = @transform_1, window_bounds = array<i64: 1, 4>}, {pipeline_mode = #tpu.pipeline_mode<synchronous>, transform_indices = @transform_2, window_bounds = array<i64: 1, 4>}, {pipeline_mode = #tpu.pipeline_mode<synchronous>, transform_indices = @transform_3, window_bounds = array<i64: 4, 32>}, {pipeline_mode = #tpu.pipeline_mode<synchronous>, transform_indices = @transform_4, window_bounds = array<i64: 1, 32>}, {transform_indices = @transform_5, window_bounds = array<i64: 8, 2, 16, 16>}]} {
    %c0 = arith.constant 0 : index
    %c0_0 = arith.constant 0 : index
    %c0_1 = arith.constant 0 : index
    %0 = vector.load %arg1[%c0, %c0_0, %c0_1] : memref<8x16x4xf32, #tpu.memory_space<vmem>>, vector<8x16x4xf32>
    %1 = vector.shape_cast %0 : vector<8x16x4xf32> to vector<128x4xf32>
    %cst = arith.constant dense<0.000000e+00> : vector<128xf32>
    %2 = vector.multi_reduction <add>, %1, %cst [1] : vector<128x4xf32> to vector<128xf32>
    %3 = vector.shape_cast %2 : vector<128xf32> to vector<128x1xf32>
    %cst_2 = arith.constant 4.000000e+00 : f32
    %4 = vector.broadcast %cst_2 : f32 to vector<128x1xf32>
    %5 = arith.divf %3, %4 : vector<128x1xf32>
    %6 = vector.broadcast %5 : vector<128x1xf32> to vector<128x4xf32>
    %7 = arith.subf %1, %6 : vector<128x4xf32>
    %8 = arith.mulf %7, %7 : vector<128x4xf32>
    %cst_3 = arith.constant dense<0.000000e+00> : vector<128xf32>
    %9 = vector.multi_reduction <add>, %8, %cst_3 [1] : vector<128x4xf32> to vector<128xf32>
    %10 = vector.shape_cast %9 : vector<128xf32> to vector<128x1xf32>
    %cst_4 = arith.constant 4.000000e+00 : f32
    %11 = vector.broadcast %cst_4 : f32 to vector<128x1xf32>
    %12 = arith.divf %10, %11 : vector<128x1xf32>
    %13 = vector.broadcast %5 : vector<128x1xf32> to vector<128x4xf32>
    %14 = arith.subf %1, %13 : vector<128x4xf32>
    %cst_5 = arith.constant 9.99999974E-6 : f32
    %15 = vector.broadcast %cst_5 : f32 to vector<128x1xf32>
    %16 = arith.addf %12, %15 : vector<128x1xf32>
    %17 = math.rsqrt %16 : vector<128x1xf32>
    %18 = vector.broadcast %17 : vector<128x1xf32> to vector<128x4xf32>
    %19 = arith.mulf %14, %18 : vector<128x4xf32>
    %c0_6 = arith.constant 0 : index
    %c0_7 = arith.constant 0 : index
    %20 = vector.load %arg2[%c0_6, %c0_7] : memref<1x4xf32, #tpu.memory_space<vmem>>, vector<1x4xf32>
    %21 = vector.broadcast %20 : vector<1x4xf32> to vector<128x4xf32>
    %22 = arith.mulf %19, %21 : vector<128x4xf32>
    %c0_8 = arith.constant 0 : index
    %c0_9 = arith.constant 0 : index
    %23 = vector.load %arg3[%c0_8, %c0_9] : memref<1x4xf32, #tpu.memory_space<vmem>>, vector<1x4xf32>
    %24 = vector.broadcast %23 : vector<1x4xf32> to vector<128x4xf32>
    %25 = arith.addf %22, %24 : vector<128x4xf32>
    %c0_10 = arith.constant 0 : index
    %c0_11 = arith.constant 0 : index
    %26 = vector.load %arg4[%c0_10, %c0_11] : memref<4x32xf32, #tpu.memory_space<vmem>>, vector<4x32xf32>
    %cst_12 = arith.constant dense<0.000000e+00> : vector<128x32xf32>
    %27 = tpu.matmul %25, %26, %cst_12 {dimension_numbers = #tpu.dot_dimension_numbers<[1], [0], [0], [1], [0, 0, 1, 1], [], []>} : vector<128x4xf32>, vector<4x32xf32>, vector<128x32xf32> -> vector<128x32xf32>
    %c0_13 = arith.constant 0 : index
    %c0_14 = arith.constant 0 : index
    %28 = vector.load %arg5[%c0_13, %c0_14] : memref<1x32xf32, #tpu.memory_space<vmem>>, vector<1x32xf32>
    %29 = vector.broadcast %28 : vector<1x32xf32> to vector<128x32xf32>
    %30 = arith.addf %27, %29 : vector<128x32xf32>
    %31 = vector.extract_strided_slice %30 {offsets = [0, 0], sizes = [128, 16], strides = [1, 1]} : vector<128x32xf32> to vector<128x16xf32>
    %cst_15 = arith.constant 0.353553385 : f32
    %32 = vector.broadcast %cst_15 : f32 to vector<128x16xf32>
    %33 = arith.mulf %31, %32 : vector<128x16xf32>
    %34 = vector.extract_strided_slice %30 {offsets = [0, 16], sizes = [128, 16], strides = [1, 1]} : vector<128x32xf32> to vector<128x16xf32>
    %35 = vector.extract_strided_slice %33 {offsets = [0, 0], sizes = [128, 8], strides = [1, 1]} : vector<128x16xf32> to vector<128x8xf32>
    %36 = vector.shape_cast %35 : vector<128x8xf32> to vector<8x16x8xf32>
    %37 = vector.extract_strided_slice %34 {offsets = [0, 0], sizes = [128, 8], strides = [1, 1]} : vector<128x16xf32> to vector<128x8xf32>
    %38 = vector.shape_cast %37 : vector<128x8xf32> to vector<8x16x8xf32>
    "tpu.trace_start"() <{level = 10 : i32, message = "bid,bjd->bij"}> : () -> ()
    %cst_16 = arith.constant dense<0.000000e+00> : vector<8x16x16xf32>
    %39 = tpu.matmul %36, %38, %cst_16 {dimension_numbers = #tpu.dot_dimension_numbers<[2], [2], [1], [1], [0, 0, 0, 1, 1, 1], [0], [0]>} : vector<8x16x8xf32>, vector<8x16x8xf32>, vector<8x16x16xf32> -> vector<8x16x16xf32>
    "tpu.trace_stop"() : () -> ()
    %cst_17 = arith.constant dense<0xFF800000> : vector<8x16xf32>
    %40 = vector.multi_reduction <maximumf>, %39, %cst_17 [2] : vector<8x16x16xf32> to vector<8x16xf32>
    %41 = vector.shape_cast %40 : vector<8x16xf32> to vector<8x16x1xf32>
    %42 = vector.broadcast %41 : vector<8x16x1xf32> to vector<8x16x16xf32>
    %43 = arith.subf %39, %42 : vector<8x16x16xf32>
    %44 = math.exp %43 : vector<8x16x16xf32>
    %cst_18 = arith.constant dense<0.000000e+00> : vector<8x16xf32>
    %45 = vector.multi_reduction <add>, %44, %cst_18 [2] : vector<8x16x16xf32> to vector<8x16xf32>
    %46 = vector.shape_cast %45 : vector<8x16xf32> to vector<8x16x1xf32>
    %47 = tpu.reciprocal %46 {approx = true} : vector<8x16x1xf32> -> vector<8x16x1xf32>
    %48 = vector.broadcast %47 : vector<8x16x1xf32> to vector<8x16x16xf32>
    %49 = arith.mulf %44, %48 : vector<8x16x16xf32>
    %c0_19 = arith.constant 0 : index
    %c0_20 = arith.constant 0 : index
    %c0_21 = arith.constant 0 : index
    %c0_22 = arith.constant 0 : index
    %50 = vector.load %arg6[%c0_19, %c0_20, %c0_21, %c0_22] : memref<8x2x16x16xf32, #tpu.memory_space<vmem>>, vector<8x1x16x16xf32>
    %51 = vector.shape_cast %50 : vector<8x1x16x16xf32> to vector<8x16x16xf32>
    %52 = vector.shape_cast %49 : vector<8x16x16xf32> to vector<8x1x16x16xf32>
    tpu.vector_store %arg6[%c0_19, %c0_20, %c0_21, %c0_22], %52 {strides = array<i32>} : memref<8x2x16x16xf32, #tpu.memory_space<vmem>>, vector<8x1x16x16xf32>,
    %53 = vector.extract_strided_slice %33 {offsets = [0, 8], sizes = [128, 8], strides = [1, 1]} : vector<128x16xf32> to vector<128x8xf32>
    %54 = vector.shape_cast %53 : vector<128x8xf32> to vector<8x16x8xf32>
    %55 = vector.extract_strided_slice %34 {offsets = [0, 8], sizes = [128, 8], strides = [1, 1]} : vector<128x16xf32> to vector<128x8xf32>
    %56 = vector.shape_cast %55 : vector<128x8xf32> to vector<8x16x8xf32>
    "tpu.trace_start"() <{level = 10 : i32, message = "bid,bjd->bij"}> : () -> ()
    %cst_23 = arith.constant dense<0.000000e+00> : vector<8x16x16xf32>
    %57 = tpu.matmul %54, %56, %cst_23 {dimension_numbers = #tpu.dot_dimension_numbers<[2], [2], [1], [1], [0, 0, 0, 1, 1, 1], [0], [0]>} : vector<8x16x8xf32>, vector<8x16x8xf32>, vector<8x16x16xf32> -> vector<8x16x16xf32>
    "tpu.trace_stop"() : () -> ()
    %cst_24 = arith.constant dense<0xFF800000> : vector<8x16xf32>
    %58 = vector.multi_reduction <maximumf>, %57, %cst_24 [2] : vector<8x16x16xf32> to vector<8x16xf32>
    %59 = vector.shape_cast %58 : vector<8x16xf32> to vector<8x16x1xf32>
    %60 = vector.broadcast %59 : vector<8x16x1xf32> to vector<8x16x16xf32>
    %61 = arith.subf %57, %60 : vector<8x16x16xf32>
    %62 = math.exp %61 : vector<8x16x16xf32>
    %cst_25 = arith.constant dense<0.000000e+00> : vector<8x16xf32>
    %63 = vector.multi_reduction <add>, %62, %cst_25 [2] : vector<8x16x16xf32> to vector<8x16xf32>
    %64 = vector.shape_cast %63 : vector<8x16xf32> to vector<8x16x1xf32>
    %65 = tpu.reciprocal %64 {approx = true} : vector<8x16x1xf32> -> vector<8x16x1xf32>
    %66 = vector.broadcast %65 : vector<8x16x1xf32> to vector<8x16x16xf32>
    %67 = arith.mulf %62, %66 : vector<8x16x16xf32>
    %c0_26 = arith.constant 0 : index
    %c1 = arith.constant 1 : index
    %c0_27 = arith.constant 0 : index
    %c0_28 = arith.constant 0 : index
    %68 = vector.load %arg6[%c0_26, %c1, %c0_27, %c0_28] : memref<8x2x16x16xf32, #tpu.memory_space<vmem>>, vector<8x1x16x16xf32>
    %69 = vector.shape_cast %68 : vector<8x1x16x16xf32> to vector<8x16x16xf32>
    %70 = vector.shape_cast %67 : vector<8x16x16xf32> to vector<8x1x16x16xf32>
    tpu.vector_store %arg6[%c0_26, %c1, %c0_27, %c0_28], %70 {strides = array<i32>} : memref<8x2x16x16xf32, #tpu.memory_space<vmem>>, vector<8x1x16x16xf32>,
    return
  }
  func.func @transform_0(%arg0: i32) -> (i32, i32, i32) {
    %c0_i32 = arith.constant 0 : i32
    %c0_i32_0 = arith.constant 0 : i32
    %c0_i32_1 = arith.constant 0 : i32
    return %arg0, %c0_i32, %c0_i32_0 : i32, i32, i32
  }
  func.func @transform_1(%arg0: i32) -> (i32, i32) {
    %c0_i32 = arith.constant 0 : i32
    %c0_i32_0 = arith.constant 0 : i32
    %c0_i32_1 = arith.constant 0 : i32
    return %c0_i32, %c0_i32_0 : i32, i32
  }
  func.func @transform_2(%arg0: i32) -> (i32, i32) {
    %c0_i32 = arith.constant 0 : i32
    %c0_i32_0 = arith.constant 0 : i32
    %c0_i32_1 = arith.constant 0 : i32
    return %c0_i32, %c0_i32_0 : i32, i32
  }
  func.func @transform_3(%arg0: i32) -> (i32, i32) {
    %c0_i32 = arith.constant 0 : i32
    %c0_i32_0 = arith.constant 0 : i32
    %c0_i32_1 = arith.constant 0 : i32
    return %c0_i32, %c0_i32_0 : i32, i32
  }
  func.func @transform_4(%arg0: i32) -> (i32, i32) {
    %c0_i32 = arith.constant 0 : i32
    %c0_i32_0 = arith.constant 0 : i32
    %c0_i32_1 = arith.constant 0 : i32
    return %c0_i32, %c0_i32_0 : i32, i32
  }
  func.func @transform_5(%arg0: i32) -> (i32, i32, i32, i32) {
    %c0_i32 = arith.constant 0 : i32
    %c0_i32_0 = arith.constant 0 : i32
    %c0_i32_1 = arith.constant 0 : i32
    %c0_i32_2 = arith.constant 0 : i32
    return %arg0, %c0_i32, %c0_i32_0, %c0_i32_1 : i32, i32, i32, i32
  }
}

</mosaic_0001>

<bundles_post_ra>
// kernel: tpu_custom_call.1
= control target key start
LH: loop header
LB: loop body
LE: loop exit
PB: predicated region body
PF: predicated region fallthrough
CT: control target
= control target key end

     0   :  { %10 = vsyncpa [#allocation3], 0  ;;  %s3384_s0 = inlined_call_operand.vmem [shape: f32[16,16,4], index: 0, kind: input, shape index: {}]   ;;  %s3385_s1 = inlined_call_operand.vmem [shape: f32[1,4], index: 1, kind: input, shape index: {}]   ;;  %s3386_s2 = inlined_call_operand.vmem [shape: f32[1,4], index: 2, kind: input, shape index: {}]   ;;  %s3387_s3 = inlined_call_operand.vmem [shape: f32[4,32], index: 3, kind: input, shape index: {}]   ;;  %s3388_s4 = inlined_call_operand.vmem [shape: f32[1,32], index: 4, kind: input, shape index: {}]   ;;  %s3389_s5 = inlined_call_operand.hbm [shape: f32[16,2,16,16], index: 5, kind: output, shape index: {}]  }
   0x1   :  { %12 = vsyncpa [#allocation3 + $0x1], 0  ;;  %s2298_s18 = smov 0   ;;  %s2300_s19 = smov 0  }
   0x2   :  { %s2302_s20 = smov 0   ;;  %s2304_s21 = smov 0  }
   0x3 LB: > { %s2319_s22 = sadd.s32 4294967295, %s2260_s21   ;;  %s1873_s23 = sadd.s32 4294967294, %s2260_s21   ;;  %s2260_s21 = sphi %s2304_s21, %s3407_s21   ;;  %s2256_s20 = sphi %s2302_s20, %s3406_s20   ;;  %s2252_s19 = sphi %s2300_s19, %s3405_s19   ;;  %s2248_s18 = sphi %s2298_s18, %s3404_s18  }
   0x4   : > { %s2323_s24 = sadd.s32 1, %s2260_s21   ;;  %s135_s25 = sadd.s32 1, %s2256_s20 }
   0x5   : > { %s132_s26 = ssub.s32 %s2260_s21, %s2323_s24  ;;  %p145_p0 = scmp.ne.s32.totalorder %s2256_s20, %s2252_s19 }
   0x6   : > { %p133_p1 = scmp.eq.s32.totalorder %s132_s26, 0  ;;  %p146_p2 = scmp.eq.s32.totalorder %s2319_s22, 1 }
   0x7   : > { %p151_p3 = scmp.ne.s32.totalorder %s2252_s19, %s2248_s18  ;;  %p152_p4 = scmp.eq.s32.totalorder %s1873_s23, 1 }
   0x8   : > { %s2334_s27 = scalar_select %p133_p1, %s2256_s20, %s135_s25  }
   0x9   : > { %p2336_p5 = por %p146_p2, %p145_p0  ;;  %p2340_p6 = por %p152_p4, %p151_p3 }
   0xa   : > { %p1876_p7 = scmp.ge.s32.totalorder %s2260_s21, 1  ;;  %p192_p8 = scmp.lt.s32.totalorder %s2260_s21, 3 }
   0xc   : > { %p193_p9 = pnand %p1876_p7, %p192_p8 }
   0xd   : > { %s1878_s30 = sshll.u32 (!%p193_p9), %s2319_s22, 3  ;;  %s2263_s23 = smov (!%p193_p9), 112  }
   0xe   : > { %196 = sbr.rel (%p193_p9) target bundleno = 1214 (0x4be), region = 40  ;;  %p222_p10 = scmp.lt.s32.totalorder (!%p193_p9), %s1878_s30, 15 }
   0xf   : > { %s2264_s25 = smov (!%p193_p9), 120   ;;  %s2265_s26 = smov (!%p193_p9), 104  }
  0x10   : > { %s1986_s8 = sshll.u32 (!%p193_p9), %s2319_s22, 8 }
  0x11   : > { %s1807_s11 = scalar_lea.hbm (!%p193_p9), %s3389_s5, %s1986_s8 }
  0x12   : > { %s1810_s13 = sshll.u32 (!%p193_p9), %s1807_s11, 4  ;;  %s1811_s13 = int_to_ptr.hbm [resolvable:$true] %s1810_s13 }
  0x13   : > { %s3409_s30 = smov (!%p222_p10, %s1878_s30), 15  ;;  %vm245_vm0 = vcmask 31744   ;;  %v2262_v14 = vmov 4.0   ;;  %vm698_vm2 = vcmask 1043456   ;;  %s2212_s14 = sshra.s32 %s1811_s13, 4  ;;  %s2213_s14 = int_to_ptr.hbm [resolvable:$true] %s2212_s14 }
  0x14   : > { %s1984_s6 = sshll.u32 %s3409_s30, 4  ;;  %2036 = vrcp.f32 %v2262_v14  ;;  %s218_s30 = sand.u32 1, %s2252_s19  }
  0x15   : > { %s2350_s9 = scalar_lea.vmem %s3384_s0, %s1984_s6  ;;  %s1877_s6 = sshll.u32 %s218_s30, 8 }
  0x16   : > { %v231_v0 = vld [vmem:[%s2350_s9 + $0x10] sm:$0xff]  ;;  %v229_v1 = vld [vmem:[%s2350_s9] sm:$0xff]  ;;  %v230_v6 = vld [vmem:[%s2350_s9 + $0x8] sm:$0xff]  ;;  %s3238_s7 = scalar_lea.vmem [#allocation2], %s1877_s6  ;;  %s1795_s22 = scalar_lea.sflag [#allocation3], %s218_s30 }
  0x17   : > { %v252_v2 = vsel %vm245_vm0, %v231_v0, 0.0  ;;  %v246_v3 = vsel %vm245_vm0, %v229_v1, 0.0  ;;  %v233_v4 = vld [vmem:[%s2350_s9 + $0x20] sm:$0xff]  ;;  %v232_v7 = vld [vmem:[%s2350_s9 + $0x18] sm:$0xff]  ;;  %v2361_v8 = vld [vmem:[%s2350_s9 + $0x28] sm:$0xff]  ;;  %v249_v9 = vsel %vm245_vm0, %v230_v6, 0.0  ;;  %p2219_p0 = scmp.lt.s32.totalorder %s2213_s14, %s3389_s5 }
  0x18   : > { %253 = vadd.xlane.f32.xlu1 %v252_v2  ;;  %247 = vadd.xlane.f32.xlu0 %v246_v3  ;;  %v258_v5 = vsel %vm245_vm0, %v233_v4, 0.0  ;;  %v255_v10 = vsel %vm245_vm0, %v232_v7, 0.0  ;;  %v261_v11 = vsel %vm245_vm0, %v2361_v8, 0.0  ;;  %v2368_v12 = vld [vmem:[%s2350_s9 + $0x30] sm:$0xff]  ;;  %v2389_v35 = vld [vmem:[%s2350_s9 + $0x48] sm:$0xff]  ;;  %v2392_v36 = vld [vmem:[%s2350_s9 + $0x38] sm:$0xff] }
  0x19   : > { %259 = vadd.xlane.f32.xlu2 %v258_v5  ;;  %v264_v13 = vsel %vm245_vm0, %v2368_v12, 0.0  ;;  %v273_v38 = vsel %vm245_vm0, %v2389_v35, 0.0  ;;  %v267_v40 = vsel %vm245_vm0, %v2392_v36, 0.0  ;;  %v2409_v46 = vld [vmem:[%s2350_s9 + $0x68] sm:$0xff]  ;;  %v2412_v47 = vld [vmem:[%s2350_s9 + $0x40] sm:$0xff]  ;;  %v2423_v54 = vld [vmem:[%s2350_s9 + $0x50] sm:$0xff] }
  0x1a   : > { %v2037_v15 = vpop.eup %2036  ;;  %v285_v49 = vsel %vm245_vm0, %v2409_v46, 0.0  ;;  %v270_v51 = vsel %vm245_vm0, %v2412_v47, 0.0  ;;  %v2428_v56 = vld [vmem:[%s2350_s9 + $0x70] sm:$0xff]  ;;  %v276_v57 = vsel %vm245_vm0, %v2423_v54, 0.0  ;;  %v2440_v63 = vld [vmem:[%s2350_s9 + $0x58] sm:$0xff]  ;;  %s1808_s12 = sshll.u32 %s3238_s7, 4  ;;  %s1809_s12 = int_to_ptr.vmem [resolvable:$true] %s1808_s12 }
  0x1b   : > { %v295_v16 = vmul.f32 4.0, %v2037_v15  ;;  %vm299_vm1 = vweird.f32 %v2037_v15  ;;  %v288_v58 = vsel %vm245_vm0, %v2428_v56, 0.0  ;;  %v279_v2 = vsel %vm245_vm0, %v2440_v63, 0.0  ;;  %s2214_s15 = scalar_lea.hbm %s2213_s14, 256 }
  0x1c   : > { %p2215_p11 = scmp.ne.s32.totalorder %s2213_s14, %s2214_s15 }
  0x1d   : > { %v296_v17 = vsub.f32 1.0, %v295_v16 }
  0x1e   : > { %p2216_p12 = pnand %p2215_p11, %p2336_p5 }
  0x1f   : > { %v297_v18 = vmul.f32 %v2037_v15, %v296_v17 }
  0x20   : > { %250 = vadd.xlane.f32.xlu0 %v249_v9  ;;  %256 = vadd.xlane.f32.xlu1 %v255_v10  ;;  %v645_v10 = vld [vmem:[%s3387_s3] sm:$0xf]  ;;  %p2217_p13 = pneg %p2216_p12 }
  0x21   : > { %262 = vadd.xlane.f32.xlu2 %v261_v11  ;;  %v298_v19 = vadd.f32 %v2037_v15, %v297_v18  ;;  %1881 = vmatpush.msk.msra.mxu0 %vm698_vm2, %v645_v10 }
  0x22   : > { %1987 = vmatpush.msk.msra.mxu2 %vm698_vm2, %v645_v10 }
  0x23   : > { %v2372_v20 = vsel %vm299_vm1, %v2037_v15, %v298_v19 }
  0x28   : > { %265 = vadd.xlane.f32.xlu1 %v264_v13 }
  0x8b   : > { %v254_v21 = vpop.xlane.xlu1 %253  ;;  %v248_v22 = vpop.xlane.xlu0 %247 }
  0x8c   : > { %v303_v23 = vmul.f32 %v2372_v20, %v254_v21  ;;  %v301_v24 = vmul.f32 %v2372_v20, %v248_v22  ;;  %v260_v42 = vpop.xlane.xlu2 %259 }
  0x8d   : > { %v305_v45 = vmul.f32 %v2372_v20, %v260_v42 }
  0x8e   : > { %v2376_v25 = vsub.f32 %v231_v0, %v303_v23  ;;  %v2378_v26 = vsub.f32 %v229_v1, %v301_v24  ;;  %v2445_v1 = vld [vmem:[%s2350_s9 + $0x78] sm:$0xff] }
  0x8f   : > { %v2417_v50 = vsub.f32 %v233_v4, %v305_v45  ;;  %v291_v3 = vsel %vm245_vm0, %v2445_v1, 0.0 }
  0x90   : > { %v335_v27 = vmul.f32 %v2376_v25, %v2376_v25  ;;  %v333_v28 = vmul.f32 %v2378_v26, %v2378_v26 }
  0x91   : > { %v337_v55 = vmul.f32 %v2417_v50, %v2417_v50 }
  0x92   : > { %v355_v29 = vsel %vm245_vm0, %v335_v27, 0.0  ;;  %v349_v30 = vsel %vm245_vm0, %v333_v28, 0.0 }
  0x93   : > { %356 = vadd.xlane.f32.xlu1 %v355_v29  ;;  %350 = vadd.xlane.f32.xlu0 %v349_v30  ;;  %v251_v31 = vpop.xlane.xlu0 %250  ;;  %v257_v32 = vpop.xlane.xlu1 %256  ;;  %v361_v60 = vsel %vm245_vm0, %v337_v55, 0.0 }
  0x94   : > { %v302_v33 = vmul.f32 %v2372_v20, %v251_v31  ;;  %v304_v34 = vmul.f32 %v2372_v20, %v257_v32  ;;  %v263_v52 = vpop.xlane.xlu2 %262 }
  0x95   : > { %v306_v53 = vmul.f32 %v2372_v20, %v263_v52 }
  0x96   : > { %v2394_v37 = vsub.f32 %v230_v6, %v302_v33  ;;  %v2398_v39 = vsub.f32 %v232_v7, %v304_v34  ;;  %v2456_v6 = vld [vmem:[%s2350_s9 + $0x60] sm:$0xff] }
  0x97   : > { %v2435_v59 = vsub.f32 %v2361_v8, %v306_v53  ;;  %v282_v8 = vsel %vm245_vm0, %v2456_v6, 0.0 }
  0x98   : > { %v334_v41 = vmul.f32 %v2394_v37, %v2394_v37  ;;  %v336_v44 = vmul.f32 %v2398_v39, %v2398_v39 }
  0x99   : > { %v338_v0 = vmul.f32 %v2435_v59, %v2435_v59 }
  0x9a   : > { %v352_v43 = vsel %vm245_vm0, %v334_v41, 0.0  ;;  %v358_v48 = vsel %vm245_vm0, %v336_v44, 0.0 }
  0x9b   : > { %274 = vadd.xlane.f32.xlu1 %v273_v38  ;;  %268 = vadd.xlane.f32.xlu0 %v267_v40  ;;  %v266_v61 = vpop.xlane.xlu1 %265  ;;  %v364_v5 = vsel %vm245_vm0, %v338_v0, 0.0  ;;  %v2512_v0 = vld [vmem:[%s3385_s1] ss:$0 sm:$0xff] }
  0x9c   : > { %353 = vadd.xlane.f32.xlu2 %v352_v43  ;;  %v307_v62 = vmul.f32 %v2372_v20, %v266_v61 }
  0x9e   : > { %v2452_v4 = vsub.f32 %v2368_v12, %v307_v62 }
  0xa0   : > { %v339_v7 = vmul.f32 %v2452_v4, %v2452_v4 }
  0xa2   : > { %v367_v9 = vsel %vm245_vm0, %v339_v7, 0.0 }
  0xa3   : > { %359 = vadd.xlane.f32.xlu0 %v358_v48  ;;  %286 = vadd.xlane.f32.xlu1 %v285_v49 }
  0xa4   : > { %271 = vadd.xlane.f32.xlu2 %v270_v51 }
  0xab   : > { %277 = vadd.xlane.f32.xlu0 %v276_v57  ;;  %289 = vadd.xlane.f32.xlu1 %v288_v58 }
  0xac   : > { %362 = vadd.xlane.f32.xlu2 %v361_v60 }
  0xb3   : > { %280 = vadd.xlane.f32.xlu0 %v279_v2  ;;  %292 = vadd.xlane.f32.xlu1 %v291_v3 }
  0xb4   : > { %365 = vadd.xlane.f32.xlu2 %v364_v5 }
  0xbb   : > { %283 = vadd.xlane.f32.xlu0 %v282_v8 }
  0xbc   : > { %368 = vadd.xlane.f32.xlu2 %v367_v9 }
 0x106   : > { %v357_v11 = vpop.xlane.xlu1 %356  ;;  %v351_v12 = vpop.xlane.xlu0 %350 }
 0x107   : > { %v399_v13 = vmul.f32 %v357_v11, %v2372_v20  ;;  %v397_v14 = vmul.f32 %v351_v12, %v2372_v20 }
 0x109   : > { %v2468_v15 = vadd.f32 1e-05, %v399_v13  ;;  %v413_v16 = vadd.f32 1e-05, %v397_v14 }
 0x10b   : > { %2038 = vrsqrt.f32 %v2468_v15  ;;  %vm435_vm4 = vweird.f32 %v413_v16  ;;  %vm455_vm6 = vweird.f32 %v2468_v15 }
 0x10c   : > { %2040 = vrsqrt.f32 %v413_v16 }
 0x10e   : > { %v275_v17 = vpop.xlane.xlu1 %274  ;;  %v269_v18 = vpop.xlane.xlu0 %268 }
 0x10f   : > { %v310_v19 = vmul.f32 %v2372_v20, %v275_v17  ;;  %v354_v21 = vpop.xlane.xlu2 %353  ;;  %v308_v22 = vmul.f32 %v2372_v20, %v269_v18 }
 0x110   : > { %v398_v23 = vmul.f32 %v354_v21, %v2372_v20 }
 0x111   : > { %v2474_v24 = vpop.eup %2038  ;;  %v2477_v27 = vsub.f32 %v2389_v35, %v310_v19  ;;  %v2480_v28 = vsub.f32 %v2392_v36, %v308_v22 }
 0x112   : > { %v2041_v29 = vpop.eup %2040  ;;  %v2482_v30 = vadd.f32 1e-05, %v398_v23  ;;  %v450_v31 = vmul.f32 %v2474_v24, %v2468_v15  ;;  %vm456_vm7 = vweird.f32 %v2474_v24 }
 0x113   : > { %v430_v32 = vmul.f32 %v2041_v29, %v413_v16  ;;  %v342_v33 = vmul.f32 %v2477_v27, %v2477_v27  ;;  %v340_v34 = vmul.f32 %v2480_v28, %v2480_v28  ;;  %vm436_vm3 = vweird.f32 %v2041_v29  ;;  %vm2555_vm11 = vmor %vm455_vm6, %vm456_vm7 }
 0x114   : > { %2042 = vrsqrt.f32 %v2482_v30  ;;  %v451_v42 = vmul.f32 %v2474_v24, %v450_v31  ;;  %vm437_vm5 = vmor %vm435_vm4, %vm436_vm3  ;;  %vm445_vm9 = vweird.f32 %v2482_v30 }
 0x115   : > { %v431_v35 = vmul.f32 %v2041_v29, %v430_v32  ;;  %v376_v38 = vsel %vm245_vm0, %v342_v33, 0.0  ;;  %v370_v36 = vsel %vm245_vm0, %v340_v34, 0.0 }
 0x116   : > { %377 = vadd.xlane.f32.xlu1 %v376_v38  ;;  %371 = vadd.xlane.f32.xlu2 %v370_v36  ;;  %v360_v40 = vpop.xlane.xlu0 %359  ;;  %v287_v41 = vpop.xlane.xlu1 %286  ;;  %v452_v57 = vmul.f32 0.5, %v451_v42 }
 0x117   : > { %v432_v43 = vmul.f32 0.5, %v431_v35  ;;  %v272_v44 = vpop.xlane.xlu2 %271  ;;  %v400_v45 = vmul.f32 %v360_v40, %v2372_v20  ;;  %v314_v49 = vmul.f32 %v2372_v20, %v287_v41 }
 0x118   : > { %v309_v48 = vmul.f32 %v2372_v20, %v272_v44  ;;  %v453_v9 = vsub.f32 1.5, %v452_v57 }
 0x119   : > { %v433_v51 = vsub.f32 1.5, %v432_v43  ;;  %v2497_v52 = vadd.f32 1e-05, %v400_v45  ;;  %v2505_v61 = vsub.f32 %v2409_v46, %v314_v49  ;;  %v2519_v46 = vld [vmem:[%s3386_s2] ss:$0 sm:$0xff] }
 0x11a   : > { %v2043_v53 = vpop.eup %2042  ;;  %v2500_v55 = vsub.f32 %v2412_v47, %v309_v48  ;;  %v454_v31 = vmul.f32 %v2474_v24, %v453_v9 }
 0x11b   : > { %v434_v58 = vmul.f32 %v2041_v29, %v433_v51  ;;  %v440_v60 = vmul.f32 %v2043_v53, %v2482_v30  ;;  %2044 = vrsqrt.f32 %v2497_v52  ;;  %v346_v16 = vmul.f32 %v2505_v61, %v2505_v61 }
 0x11c   : > { %v341_v62 = vmul.f32 %v2500_v55, %v2500_v55  ;;  %vm446_vm8 = vweird.f32 %v2043_v53  ;;  %v458_v43 = vsel %vm2555_vm11, %v2474_v24, %v454_v31  ;;  %vm465_vm12 = vweird.f32 %v2497_v52 }
 0x11d   : > { %v438_v47 = vsel %vm437_vm5, %v2041_v29, %v434_v58  ;;  %v441_v2 = vmul.f32 %v2043_v53, %v440_v60  ;;  %vm447_vm10 = vmor %vm445_vm9, %vm446_vm8  ;;  %v388_v34 = vsel %vm245_vm0, %v346_v16, 0.0  ;;  %v591_v60 = vmul.f32 %v458_v43, %v2376_v25 }
 0x11e   : > { %v373_v3 = vsel %vm245_vm0, %v341_v62, 0.0  ;;  %v278_v5 = vpop.xlane.xlu0 %277  ;;  %v589_v7 = vmul.f32 %v438_v47, %v2378_v26  ;;  %v290_v8 = vpop.xlane.xlu1 %289 }
 0x11f   : > { %v442_v10 = vmul.f32 0.5, %v441_v2  ;;  %374 = vadd.xlane.f32.xlu0 %v373_v3  ;;  %v363_v11 = vpop.xlane.xlu2 %362  ;;  %v311_v12 = vmul.f32 %v2372_v20, %v278_v5  ;;  %v315_v13 = vmul.f32 %v2372_v20, %v290_v8 }
 0x120   : > { %v401_v14 = vmul.f32 %v363_v11, %v2372_v20  ;;  %v609_v26 = vmul.f32 %v2512_v0, %v589_v7  ;;  %v611_v7 = vmul.f32 %v2512_v0, %v591_v60 }
 0x121   : > { %v2528_v17 = vpop.eup %2044  ;;  %v443_v18 = vsub.f32 1.5, %v442_v10  ;;  %v2532_v19 = vsub.f32 %v2423_v54, %v311_v12  ;;  %v2540_v29 = vsub.f32 %v2428_v56, %v315_v13 }
 0x122   : > { %v460_v21 = vmul.f32 %v2528_v17, %v2497_v52  ;;  %v2536_v22 = vadd.f32 1e-05, %v401_v14  ;;  %v629_v23 = vadd.f32 %v2519_v46, %v609_v26  ;;  %vm466_vm13 = vweird.f32 %v2528_v17 }
 0x123   : > { %v444_v32 = vmul.f32 %v2043_v53, %v443_v18  ;;  %v343_v33 = vmul.f32 %v2532_v19, %v2532_v19  ;;  %v347_v42 = vmul.f32 %v2540_v29, %v2540_v29  ;;  %vm2584_vm14 = vmor %vm465_vm12, %vm466_vm13 }
 0x124   : > { %v461_v54 = vmul.f32 %v2528_v17, %v460_v21  ;;  %2046 = vrsqrt.f32 %v2536_v22  ;;  %1882 = vmatmul.msk.f32.vlgmr.msra.gmra.mxu0 %vm245_vm0, %v629_v23  ;;  %vm475_vm15 = vweird.f32 %v2536_v22 }
 0x125   : > { %v448_v35 = vsel %vm447_vm10, %v2043_v53, %v444_v32  ;;  %v379_v56 = vsel %vm245_vm0, %v343_v33, 0.0  ;;  %v391_v58 = vsel %vm245_vm0, %v347_v42, 0.0 }
 0x126   : > { %v462_v38 = vmul.f32 0.5, %v461_v54  ;;  %380 = vadd.xlane.f32.xlu2 %v379_v56  ;;  %v281_v36 = vpop.xlane.xlu0 %280  ;;  %v590_v40 = vmul.f32 %v448_v35, %v2394_v37  ;;  %v293_v41 = vpop.xlane.xlu1 %292 }
 0x127   : > { %389 = vadd.xlane.f32.xlu0 %v388_v34  ;;  %v366_v44 = vpop.xlane.xlu2 %365  ;;  %v312_v15 = vmul.f32 %v2372_v20, %v281_v36  ;;  %v316_v45 = vmul.f32 %v2372_v20, %v293_v41 }
 0x128   : > { %v463_v48 = vsub.f32 1.5, %v462_v38  ;;  %v402_v49 = vmul.f32 %v366_v44, %v2372_v20  ;;  %v610_v51 = vmul.f32 %v2512_v0, %v590_v40 }
 0x129   : > { %v2572_v37 = vsub.f32 %v2440_v63, %v312_v15  ;;  %v2580_v2 = vsub.f32 %v2445_v1, %v316_v45 }
 0x12a   : > { %v2047_v53 = vpop.eup %2046  ;;  %v418_v24 = vadd.f32 1e-05, %v402_v49  ;;  %v630_v57 = vadd.f32 %v2519_v46, %v610_v51  ;;  %v464_v62 = vmul.f32 %v2528_v17, %v463_v48 }
 0x12b   : > { %v470_v47 = vmul.f32 %v2047_v53, %v2536_v22  ;;  %v344_v52 = vmul.f32 %v2572_v37, %v2572_v37  ;;  %v348_v11 = vmul.f32 %v2580_v2, %v2580_v2  ;;  %vm476_vm1 = vweird.f32 %v2047_v53 }
 0x12c   : > { %2048 = vrsqrt.f32 %v418_v24  ;;  %1883 = vmatmul.msk.f32.gmra.mxu0 %vm245_vm0, %v630_v57  ;;  %v468_v1 = vsel %vm2584_vm14, %v2528_v17, %v464_v62  ;;  %v631_v17 = vadd.f32 %v2519_v46, %v611_v7  ;;  %vm477_vm2 = vmor %vm475_vm15, %vm476_vm1  ;;  %vm485_vm3 = vweird.f32 %v418_v24 }
 0x12d   : > { %v471_v3 = vmul.f32 %v2047_v53, %v470_v47  ;;  %v382_v25 = vsel %vm245_vm0, %v344_v52, 0.0  ;;  %v592_v18 = vmul.f32 %v468_v1, %v2398_v39  ;;  %v394_v31 = vsel %vm245_vm0, %v348_v11, 0.0 }
 0x12e   : > { %392 = vadd.xlane.f32.xlu2 %v391_v58  ;;  %383 = vadd.xlane.f32.xlu1 %v382_v25  ;;  %v284_v5 = vpop.xlane.xlu0 %283 }
 0x12f   : > { %v472_v8 = vmul.f32 0.5, %v471_v3  ;;  %v369_v9 = vpop.xlane.xlu2 %368  ;;  %v313_v10 = vmul.f32 %v2372_v20, %v284_v5  ;;  %v612_v33 = vmul.f32 %v2512_v0, %v592_v18 }
 0x130   : > { %v403_v12 = vmul.f32 %v369_v9, %v2372_v20 }
 0x131   : > { %v473_v13 = vsub.f32 1.5, %v472_v8  ;;  %v2600_v14 = vsub.f32 %v2456_v6, %v313_v10  ;;  %v632_v56 = vadd.f32 %v2519_v46, %v612_v33 }
 0x132   : > { %v2049_v26 = vpop.eup %2048  ;;  %v419_v16 = vadd.f32 1e-05, %v403_v12 }
 0x133   : > { %v474_v21 = vmul.f32 %v2047_v53, %v473_v13  ;;  %v480_v23 = vmul.f32 %v2049_v26, %v418_v24  ;;  %v345_v32 = vmul.f32 %v2600_v14, %v2600_v14  ;;  %vm486_vm4 = vweird.f32 %v2049_v26 }
 0x134   : > { %2050 = vrsqrt.f32 %v419_v16  ;;  %1884 = vmatmul.msk.f32.gmra.mxu0 %vm245_vm0, %v631_v17  ;;  %vm487_vm5 = vmor %vm485_vm3, %vm486_vm4  ;;  %vm495_vm6 = vweird.f32 %v419_v16 }
 0x135   : > { %v481_v22 = vmul.f32 %v2049_v26, %v480_v23  ;;  %v385_v6 = vsel %vm245_vm0, %v345_v32, 0.0  ;;  %v478_v54 = vsel %vm477_vm2, %v2047_v53, %v474_v21  ;;  %v2645_v32 = vld [vmem:[%s3388_s4] ss:$0 sm:$0xff] }
 0x136   : > { %395 = vadd.xlane.f32.xlu1 %v394_v31  ;;  %386 = vadd.xlane.f32.xlu0 %v385_v6  ;;  %v593_v30 = vmul.f32 %v478_v54, %v2417_v50 }
 0x137   : > { %v482_v39 = vmul.f32 0.5, %v481_v22 }
 0x138   : > { %v613_v41 = vmul.f32 %v2512_v0, %v593_v30 }
 0x139   : > { %v483_v34 = vsub.f32 1.5, %v482_v39 }
 0x13a   : > { %v2051_v35 = vpop.eup %2050  ;;  %v633_v15 = vadd.f32 %v2519_v46, %v613_v41 }
 0x13b   : > { %v484_v38 = vmul.f32 %v2049_v26, %v483_v34  ;;  %v490_v36 = vmul.f32 %v2051_v35, %v419_v16  ;;  %vm496_vm7 = vweird.f32 %v2051_v35 }
 0x13c   : > { %1885 = vmatmul.msk.f32.gmra.mxu0 %vm245_vm0, %v632_v56  ;;  %vm497_vm8 = vmor %vm495_vm6, %vm496_vm7 }
 0x13d   : > { %v491_v40 = vmul.f32 %v2051_v35, %v490_v36  ;;  %v488_v42 = vsel %vm487_vm5, %v2049_v26, %v484_v38 }
 0x13e   : > { %v594_v45 = vmul.f32 %v488_v42, %v2435_v59 }
 0x13f   : > { %v492_v43 = vmul.f32 0.5, %v491_v40 }
 0x140   : > { %v614_v50 = vmul.f32 %v2512_v0, %v594_v45 }
 0x141   : > { %v493_v44 = vsub.f32 1.5, %v492_v43 }
 0x142   : > { %v634_v51 = vadd.f32 %v2519_v46, %v614_v50 }
 0x143   : > { %v494_v48 = vmul.f32 %v2051_v35, %v493_v44 }
 0x144   : > { %1886 = vmatmul.msk.f32.gmra.mxu0 %vm245_vm0, %v633_v15 }
 0x145   : > { %v498_v49 = vsel %vm497_vm8, %v2051_v35, %v494_v48 }
 0x146   : > { %v595_v53 = vmul.f32 %v498_v49, %v2452_v4 }
 0x148   : > { %v615_v24 = vmul.f32 %v2512_v0, %v595_v53 }
 0x14a   : > { %v635_v57 = vadd.f32 %v2519_v46, %v615_v24 }
 0x14c   : > { %1887 = vmatmul.msk.f32.gmra.mxu0 %vm245_vm0, %v634_v51 }
 0x154   : > { %1888 = vmatmul.msk.f32.gmra.mxu0 %vm245_vm0, %v635_v57 }
 0x189   : > { %v378_v59 = vpop.xlane.xlu1 %377  ;;  %v372_v58 = vpop.xlane.xlu2 %371 }
 0x18a   : > { %v406_v60 = vmul.f32 %v378_v59, %v2372_v20  ;;  %v404_v62 = vmul.f32 %v372_v58, %v2372_v20 }
 0x18c   : > { %v2626_v47 = vadd.f32 1e-05, %v406_v60  ;;  %v420_v52 = vadd.f32 1e-05, %v404_v62 }
 0x18e   : > { %2052 = vrsqrt.f32 %v2626_v47  ;;  %vm505_vm9 = vweird.f32 %v420_v52  ;;  %vm525_vm13 = vweird.f32 %v2626_v47 }
 0x18f   : > { %2054 = vrsqrt.f32 %v420_v52 }
 0x192   : > { %v375_v4 = vpop.xlane.xlu0 %374 }
 0x193   : > { %v405_v63 = vmul.f32 %v375_v4, %v2372_v20 }
 0x194   : > { %v2630_v3 = vpop.eup %2052 }
 0x195   : > { %v2055_v25 = vpop.eup %2054  ;;  %v421_v5 = vadd.f32 1e-05, %v405_v63  ;;  %v520_v1 = vmul.f32 %v2630_v3, %v2626_v47  ;;  %vm526_vm15 = vweird.f32 %v2630_v3 }
 0x196   : > { %v500_v7 = vmul.f32 %v2055_v25, %v420_v52  ;;  %vm506_vm10 = vweird.f32 %v2055_v25  ;;  %vm2679_vm2 = vmor %vm525_vm13, %vm526_vm15 }
 0x197   : > { %2056 = vrsqrt.f32 %v421_v5  ;;  %v521_v13 = vmul.f32 %v2630_v3, %v520_v1  ;;  %vm507_vm11 = vmor %vm505_vm9, %vm506_vm10  ;;  %vm515_vm14 = vweird.f32 %v421_v5 }
 0x198   : > { %v501_v8 = vmul.f32 %v2055_v25, %v500_v7 }
 0x199   : > { %v381_v9 = vpop.xlane.xlu2 %380  ;;  %v522_v22 = vmul.f32 0.5, %v521_v13 }
 0x19a   : > { %v502_v10 = vmul.f32 0.5, %v501_v8  ;;  %v407_v11 = vmul.f32 %v381_v9, %v2372_v20  ;;  %v390_v12 = vpop.xlane.xlu0 %389 }
 0x19b   : > { %v410_v26 = vmul.f32 %v390_v12, %v2372_v20  ;;  %v523_v36 = vsub.f32 1.5, %v522_v22 }
 0x19c   : > { %v503_v16 = vsub.f32 1.5, %v502_v10  ;;  %v2637_v17 = vadd.f32 1e-05, %v407_v11 }
 0x19d   : > { %v2057_v18 = vpop.eup %2056  ;;  %v2639_v21 = vadd.f32 1e-05, %v410_v26  ;;  %v524_v53 = vmul.f32 %v2630_v3, %v523_v36 }
 0x19e   : > { %v504_v23 = vmul.f32 %v2055_v25, %v503_v16  ;;  %v510_v31 = vmul.f32 %v2057_v18, %v421_v5  ;;  %2058 = vrsqrt.f32 %v2637_v17  ;;  %vm516_vm12 = vweird.f32 %v2057_v18 }
 0x19f   : > { %2060 = vrsqrt.f32 %v2639_v21  ;;  %vm517_vm1 = vmor %vm515_vm14, %vm516_vm12  ;;  %v528_v7 = vsel %vm2679_vm2, %v2630_v3, %v524_v53  ;;  %vm535_vm4 = vweird.f32 %v2637_v17  ;;  %vm565_vm5 = vweird.f32 %v2639_v21 }
 0x1a0   : > { %v508_v6 = vsel %vm507_vm11, %v2055_v25, %v504_v23  ;;  %v511_v33 = vmul.f32 %v2057_v18, %v510_v31 }
 0x1a1   : > { %v719_v54 = vpop.f32.mrf.mxu0  ;;  %v393_v39 = vpop.xlane.xlu2 %392  ;;  %v596_v34 = vmul.f32 %v508_v6, %v2480_v28 }
 0x1a2   : > { %v512_v35 = vmul.f32 0.5, %v511_v33  ;;  %v720_v56 = vadd.f32 %v2645_v32, %v719_v54  ;;  %v411_v30 = vmul.f32 %v393_v39, %v2372_v20  ;;  %v384_v38 = vpop.xlane.xlu1 %383 }
 0x1a3   : > { %v408_v40 = vmul.f32 %v384_v38, %v2372_v20  ;;  %v616_v41 = vmul.f32 %v2512_v0, %v596_v34 }
 0x1a4   : > { %v2653_v42 = vpop.eup %2058  ;;  %v513_v43 = vsub.f32 1.5, %v512_v35  ;;  %v2655_v44 = vadd.f32 1e-05, %v411_v30  ;;  %785 = vrot.lane.b32.xlu2 %v720_v56, %s2263_s23  ;;  %v2658_v28 = vmul.f32 0.35355338, %v720_v56 }
 0x1a5   : > { %v2061_v15 = vpop.eup %2060  ;;  %v530_v45 = vmul.f32 %v2653_v42, %v2637_v17  ;;  %v2663_v48 = vadd.f32 1e-05, %v408_v40  ;;  %v636_v50 = vadd.f32 %v2519_v46, %v616_v41  ;;  %vm536_vm6 = vweird.f32 %v2653_v42 }
 0x1a6   : > { %v514_v49 = vmul.f32 %v2057_v18, %v513_v43  ;;  %v560_v51 = vmul.f32 %v2061_v15, %v2639_v21  ;;  %2062 = vrsqrt.f32 %v2655_v44  ;;  %1289 = vrot.lane.b32.xlu0 %v2658_v28, %s2264_s25  ;;  %vm566_vm3 = vweird.f32 %v2061_v15  ;;  %vm2713_vm8 = vmor %vm535_vm4, %vm536_vm6 }
 0x1a7   : > { %v531_v24 = vmul.f32 %v2653_v42, %v530_v45  ;;  %2064 = vrsqrt.f32 %v2663_v48  ;;  %1889 = vmatmul.msk.f32.gmra.mxu0 %vm245_vm0, %v636_v50  ;;  %vm567_vm7 = vmor %vm565_vm5, %vm566_vm3  ;;  %vm575_vm9 = vweird.f32 %v2655_v44  ;;  %vm545_vm12 = vweird.f32 %v2663_v48 }
 0x1a8   : > { %v518_v57 = vsel %vm517_vm1, %v2057_v18, %v514_v49  ;;  %v561_v59 = vmul.f32 %v2061_v15, %v560_v51  ;;  %v598_v18 = vmul.f32 %v528_v7, %v2477_v27  ;;  %vm789_vm6 = vcmask 64512  }
 0x1a9   : > { %v532_v58 = vmul.f32 0.5, %v531_v24  ;;  %v722_v60 = vpop.f32.mrf.mxu0  ;;  %v387_v62 = vpop.xlane.xlu0 %386  ;;  %v597_v52 = vmul.f32 %v518_v57, %v2500_v55 }
 0x1aa   : > { %v562_v63 = vmul.f32 0.5, %v561_v59  ;;  %v396_v25 = vpop.xlane.xlu1 %395  ;;  %v409_v5 = vmul.f32 %v387_v62, %v2372_v20  ;;  %v2688_v1 = vadd.f32 %v2645_v32, %v722_v60 }
 0x1ab   : > { %v412_v55 = vmul.f32 %v396_v25, %v2372_v20  ;;  %v533_v47 = vsub.f32 1.5, %v532_v58  ;;  %v617_v11 = vmul.f32 %v2512_v0, %v597_v52 }
 0x1ac   : > { %v2063_v8 = vpop.eup %2062  ;;  %v563_v9 = vsub.f32 1.5, %v562_v63  ;;  %v2691_v10 = vadd.f32 1e-05, %v409_v5  ;;  %1293 = vrot.lane.b32.xlu2 %v720_v56, %s2265_s26 }
 0x1ad   : > { %v2695_v12 = vpop.eup %2064  ;;  %v570_v3 = vmul.f32 %v2063_v8, %v2655_v44  ;;  %v428_v13 = vadd.f32 1e-05, %v412_v55  ;;  %v534_v21 = vmul.f32 %v2653_v42, %v533_v47  ;;  %v637_v22 = vadd.f32 %v2519_v46, %v617_v11 }
 0x1ae   : > { %v564_v20 = vmul.f32 %v2061_v15, %v563_v9  ;;  %v540_v26 = vmul.f32 %v2695_v12, %v2663_v48  ;;  %2066 = vrsqrt.f32 %v2691_v10  ;;  %787 = vrot.lane.b32.xlu0 %v2688_v1, %s2263_s23  ;;  %vm576_vm10 = vweird.f32 %v2063_v8 }
 0x1af   : > { %v571_v16 = vmul.f32 %v2063_v8, %v570_v3  ;;  %2068 = vrsqrt.f32 %v428_v13  ;;  %1890 = vmatmul.msk.f32.gmra.mxu0 %vm245_vm0, %v637_v22  ;;  %v538_v30 = vsel %vm2713_vm8, %v2653_v42, %v534_v21  ;;  %vm2727_vm11 = vmor %vm575_vm9, %vm576_vm10  ;;  %vm546_vm13 = vweird.f32 %v2695_v12 }
 0x1b0   : > { %v568_v23 = vsel %vm567_vm7, %v2061_v15, %v564_v20  ;;  %v541_v31 = vmul.f32 %v2695_v12, %v540_v26  ;;  %v599_v51 = vmul.f32 %v538_v30, %v2532_v19  ;;  %vm2745_vm14 = vmor %vm545_vm12, %vm546_vm13  ;;  %vm585_vm15 = vweird.f32 %v428_v13 }
 0x1b1   : > { %v572_v33 = vmul.f32 0.5, %v571_v16  ;;  %v725_v54 = vpop.f32.mrf.mxu0  ;;  %v602_v27 = vmul.f32 %v568_v23, %v2505_v61  ;;  %v618_v61 = vmul.f32 %v2512_v0, %v598_v18  ;;  %vm555_vm3 = vweird.f32 %v2691_v10 }
 0x1b2   : > { %v542_v39 = vmul.f32 0.5, %v541_v31  ;;  %v2721_v34 = vadd.f32 %v2645_v32, %v725_v54  ;;  %v619_v62 = vmul.f32 %v2512_v0, %v599_v51 }
 0x1b3   : > { %v573_v35 = vsub.f32 1.5, %v572_v33  ;;  %v622_v17 = vmul.f32 %v2512_v0, %v602_v27  ;;  %v638_v49 = vadd.f32 %v2519_v46, %v618_v61 }
 0x1b4   : > { %v2067_v56 = vpop.eup %2066  ;;  %1332 = vrot.lane.b32.xlu2 %v2721_v34, %s2265_s26  ;;  %v543_v41 = vsub.f32 1.5, %v542_v39  ;;  %v639_v25 = vadd.f32 %v2519_v46, %v619_v62  ;;  %v2813_v38 = vmul.f32 0.35355338, %v2721_v34 }
 0x1b5   : > { %v2069_v36 = vpop.eup %2068  ;;  %v574_v40 = vmul.f32 %v2063_v8, %v573_v35  ;;  %v550_v43 = vmul.f32 %v2067_v56, %v2691_v10  ;;  %v642_v44 = vadd.f32 %v2519_v46, %v622_v17  ;;  %vm556_vm4 = vweird.f32 %v2067_v56 }
 0x1b6   : > { %v580_v15 = vmul.f32 %v2069_v36, %v428_v13  ;;  %v544_v24 = vmul.f32 %v2695_v12, %v543_v41  ;;  %vm586_vm1 = vweird.f32 %v2069_v36  ;;  %vm557_vm5 = vmor %vm555_vm3, %vm556_vm4 }
 0x1b7   : > { %v578_v42 = vsel %vm2727_vm11, %v2063_v8, %v574_v40  ;;  %v551_v45 = vmul.f32 %v2067_v56, %v550_v43  ;;  %1895 = vmatmul.msk.f32.vlgmr.msra.gmra.mxu2 %vm245_vm0, %v642_v44  ;;  %1891 = vmatmul.msk.f32.gmra.mxu0 %vm245_vm0, %v638_v49  ;;  %vm587_vm2 = vmor %vm585_vm15, %vm586_vm1 }
 0x1b8   : > { %v581_v50 = vmul.f32 %v2069_v36, %v580_v15  ;;  %v603_v53 = vmul.f32 %v578_v42, %v2540_v29  ;;  %v548_v29 = vsel %vm2745_vm14, %v2695_v12, %v544_v24 }
 0x1b9   : > { %v552_v57 = vmul.f32 0.5, %v551_v45  ;;  %v600_v5 = vmul.f32 %v548_v29, %v2572_v37  ;;  %v728_v3 = vpop.f32.mrf.mxu0 }
 0x1ba   : > { %v582_v48 = vmul.f32 0.5, %v581_v50  ;;  %v623_v58 = vmul.f32 %v2512_v0, %v603_v53  ;;  %v729_v39 = vadd.f32 %v2645_v32, %v728_v3 }
 0x1bb   : > { %v553_v52 = vsub.f32 1.5, %v552_v57  ;;  %v620_v47 = vmul.f32 %v2512_v0, %v600_v5 }
 0x1bc   : > { %v583_v60 = vsub.f32 1.5, %v582_v48  ;;  %v643_v19 = vadd.f32 %v2519_v46, %v623_v58  ;;  %v770_v44 = vmul.f32 0.35355338, %v729_v39 }
 0x1bd   : > { %v554_v7 = vmul.f32 %v2067_v56, %v553_v52  ;;  %v640_v11 = vadd.f32 %v2519_v46, %v620_v47 }
 0x1be   : > { %v584_v4 = vmul.f32 %v2069_v36, %v583_v60 }
 0x1bf   : > { %1896 = vmatmul.msk.f32.gmra.mxu2 %vm245_vm0, %v643_v19  ;;  %1892 = vmatmul.msk.f32.gmra.mxu0 %vm245_vm0, %v639_v25  ;;  %v558_v9 = vsel %vm557_vm5, %v2067_v56, %v554_v7 }
 0x1c0   : > { %v588_v63 = vsel %vm587_vm2, %v2069_v36, %v584_v4  ;;  %v601_v12 = vmul.f32 %v558_v9, %v2600_v14 }
 0x1c1   : > { %v604_v55 = vmul.f32 %v588_v63, %v2580_v2  ;;  %v731_v26 = vpop.f32.mrf.mxu0 }
 0x1c2   : > { %v621_v37 = vmul.f32 %v2512_v0, %v601_v12  ;;  %v732_v35 = vadd.f32 %v2645_v32, %v731_v26 }
 0x1c3   : > { %v624_v8 = vmul.f32 %v2512_v0, %v604_v55  ;;  %v768_v0 = vmul.f32 0.35355338, %v2688_v1 }
 0x1c4   : > { %v641_v2 = vadd.f32 %v2519_v46, %v621_v37  ;;  %v771_v15 = vmul.f32 0.35355338, %v732_v35 }
 0x1c5   : > { %v644_v10 = vadd.f32 %v2519_v46, %v624_v8 }
 0x1c7   : > { %1897 = vmatmul.msk.f32.gmra.mxu2 %vm245_vm0, %v644_v10  ;;  %1893 = vmatmul.msk.f32.gmra.mxu0 %vm245_vm0, %v640_v11 }
 0x1c9   : > { %v734_v14 = vpop.f32.mrf.mxu0 }
 0x1ca   : > { %v735_v33 = vadd.f32 %v2645_v32, %v734_v14 }
 0x1cc   : > { %v772_v50 = vmul.f32 0.35355338, %v735_v33 }
 0x1cf   : > { %1894 = vmatmul.msk.f32.gmra.mxu0 %vm245_vm0, %v641_v2  ;;  %vm1096_vm0 = vcmask 130048  }
 0x1d1   : > { %v737_v46 = vpop.f32.mrf.mxu0 }
 0x1fe   : > { %v786_v16 = vpop.permute.xlu2 %785 }
 0x206   : > { %v2847_v49 = vpop.permute.xlu2 %1293 }
 0x20e   : > { %v2860_v53 = vpop.permute.xlu2 %1332 }
 0x218   : > { %v2772_v13 = vpop.permute.xlu0 %1289 }
 0x220   : > { %v788_v20 = vpop.permute.xlu0 %787 }
 0x221   : > { %1898 = vmatpush.xpose.msk.msra.mxu1 %vm789_vm6, %v788_v20 }
 0x224   : > { %v740_v23 = vpop.f32.mrf.mxu0 }
 0x225   : > { %1899 = vmatpush.xpose.msk.msra.mxu1 %vm789_vm6, %v786_v16  ;;  %v741_v17 = vadd.f32 %v2645_v32, %v740_v23 }
 0x227   : > { %v2840_v45 = vmul.f32 0.35355338, %v741_v17 }
 0x228   : > { %1900 = vmatmul.msk.f32.vlgmr.msra.gmra.mxu1 %vm789_vm6, %v2658_v28 }
 0x22c   : > { %v743_v28 = vpop.f32.mrf.mxu0 }
 0x22d   : > { %v744_v30 = vadd.f32 %v2645_v32, %v743_v28 }
 0x230   : > { %1901 = vmatmul.msk.f32.gmra.mxu1 %vm789_vm6, %v768_v0 }
 0x234   : > { %v746_v27 = vpop.f32.mrf.mxu0 }
 0x235   : > { %v747_v41 = vadd.f32 %v2645_v32, %v746_v27 }
 0x237   : > { %v2853_v51 = vmul.f32 0.35355338, %v747_v41 }
 0x23a   : > { %v758_v18 = vpop.f32.mrf.mxu2 }
 0x23b   : > { %v2781_v21 = vadd.f32 %v2645_v32, %v758_v18 }
 0x23c   : > { %v749_v56 = vpop.f32.mrf.mxu0 }
 0x23d   : > { %1022 = vrot.lane.b32.xlu1 %v2781_v21, %s2263_s23  ;;  %v750_v36 = vadd.f32 %v2645_v32, %v749_v56  ;;  %v2873_v58 = vmul.f32 0.35355338, %v2781_v21 }
 0x23f   : > { %v777_v24 = vmul.f32 0.35355338, %v750_v36 }
 0x242   : > { %v761_v31 = vpop.f32.mrf.mxu2 }
 0x243   : > { %v2786_v22 = vadd.f32 %v2645_v32, %v761_v31 }
 0x244   : > { %v752_v61 = vpop.f32.mrf.mxu0 }
 0x245   : > { %1059 = vrot.lane.b32.xlu0 %v2786_v22, %s2263_s23  ;;  %1295 = vrot.lane.b32.xlu1 %v2688_v1, %s2265_s26  ;;  %v738_v1 = vadd.f32 %v2645_v32, %v737_v46  ;;  %v753_v40 = vadd.f32 %v2645_v32, %v752_v61  ;;  %v2870_v48 = vmul.f32 0.35355338, %v2786_v22 }
 0x247   : > { %v2832_v42 = vmul.f32 0.35355338, %v738_v1  ;;  %v2875_v60 = vmul.f32 0.35355338, %v753_v40 }
 0x24a   : > { %v764_v6 = vpop.f32.mrf.mxu2 }
 0x24b   : > { %v2794_v54 = vadd.f32 %v2645_v32, %v764_v6 }
 0x24d   : > { %1061 = vrot.lane.b32.xlu2 %v2794_v54, %s2263_s23  ;;  %866 = vrot.lane.b32.xlu0 %v735_v33, %s2263_s23  ;;  %v2885_v29 = vmul.f32 0.35355338, %v2794_v54 }
 0x24e   : > { %825 = vrot.lane.b32.xlu1 %v2721_v34, %s2263_s23  ;;  %v755_v34 = vpop.f32.mrf.mxu0 }
 0x24f   : > { %v756_v43 = vadd.f32 %v2645_v32, %v755_v34  ;;  %v2838_v32 = vmul.f32 0.35355338, %v744_v30 }
 0x251   : > { %v2862_v57 = vmul.f32 0.35355338, %v756_v43 }
 0x255   : > { %827 = vrot.lane.b32.xlu2 %v729_v39, %s2263_s23  ;;  %903 = vrot.lane.b32.xlu0 %v738_v1, %s2263_s23 }
 0x256   : > { %1334 = vrot.lane.b32.xlu1 %v729_v39, %s2265_s26 }
 0x25d   : > { %864 = vrot.lane.b32.xlu2 %v732_v35, %s2263_s23  ;;  %1291 = vrot.lane.b32.xlu0 %v768_v0, %s2264_s25 }
 0x25e   : > { %905 = vrot.lane.b32.xlu1 %v741_v17, %s2263_s23 }
 0x265   : > { %942 = vrot.lane.b32.xlu2 %v744_v30, %s2263_s23  ;;  %1371 = vrot.lane.b32.xlu0 %v732_v35, %s2265_s26 }
 0x266   : > { %1328 = vrot.lane.b32.xlu1 %v2813_v38, %s2264_s25 }
 0x26d   : > { %981 = vrot.lane.b32.xlu2 %v750_v36, %s2263_s23  ;;  %983 = vrot.lane.b32.xlu0 %v753_v40, %s2263_s23 }
 0x26e   : > { %944 = vrot.lane.b32.xlu1 %v747_v41, %s2263_s23 }
 0x275   : > { %1373 = vrot.lane.b32.xlu2 %v735_v33, %s2265_s26  ;;  %1020 = vrot.lane.b32.xlu0 %v756_v43, %s2263_s23  ;;  %s2218_s23 = scalar_lea.hbm %s3389_s5, 512 }
 0x276   : > { %1412 = vrot.lane.b32.xlu1 %v741_v17, %s2265_s26  ;;  %p2220_p1 = scmp.lt.s32.totalorder %s2218_s23, %s2214_s15 }
 0x278   : > { %p2221_p2 = por %p2220_p1, %p2219_p0 }
 0x27a   : > { %p2222_p3 = pnand %p2221_p2, %p2217_p13 }
 0x27d   : > { %1410 = vrot.lane.b32.xlu2 %v738_v1, %s2265_s26  ;;  %1451 = vrot.lane.b32.xlu0 %v747_v41, %s2265_s26 }
 0x27e   : > { %1330 = vrot.lane.b32.xlu1 %v770_v44, %s2264_s25 }
 0x285   : > { %1367 = vrot.lane.b32.xlu2 %v771_v15, %s2264_s25  ;;  %1449 = vrot.lane.b32.xlu0 %v744_v30, %s2265_s26 }
 0x286   : > { %1406 = vrot.lane.b32.xlu1 %v2832_v42, %s2264_s25 }
 0x28d   : > { %1445 = vrot.lane.b32.xlu2 %v2838_v32, %s2264_s25  ;;  %1408 = vrot.lane.b32.xlu0 %v2840_v45, %s2264_s25 }
 0x28e   : > { %1369 = vrot.lane.b32.xlu1 %v772_v50, %s2264_s25 }
 0x295   : > { %1490 = vrot.lane.b32.xlu2 %v753_v40, %s2265_s26  ;;  %1488 = vrot.lane.b32.xlu0 %v750_v36, %s2265_s26 }
 0x296   : > { %1529 = vrot.lane.b32.xlu1 %v2781_v21, %s2265_s26 }
 0x29d   : > { %1527 = vrot.lane.b32.xlu2 %v756_v43, %s2265_s26  ;;  %1568 = vrot.lane.b32.xlu0 %v2794_v54, %s2265_s26 }
 0x29e   : > { %1447 = vrot.lane.b32.xlu1 %v2853_v51, %s2264_s25 }
 0x2a5   : > { %1484 = vrot.lane.b32.xlu2 %v777_v24, %s2264_s25  ;;  %1566 = vrot.lane.b32.xlu0 %v2786_v22, %s2265_s26  ;;  %v2895_v9 = vpop.f32.mrf.mxu1 }
 0x2a6   : > { %1523 = vrot.lane.b32.xlu1 %v2862_v57, %s2264_s25  ;;  %v1097_v3 = vsel %vm1096_vm0, %v2895_v9, -inf }
 0x2a7   : > { %v1062_v59 = vpop.permute.xlu2 %1061 }
 0x2ad   : > { %1562 = vrot.lane.b32.xlu2 %v2870_v48, %s2264_s25  ;;  %1525 = vrot.lane.b32.xlu0 %v2873_v58, %s2264_s25  ;;  %v2900_v37 = vpop.f32.mrf.mxu1 }
 0x2ae   : > { %1486 = vrot.lane.b32.xlu1 %v2875_v60, %s2264_s25  ;;  %v1100_v2 = vsel %vm1096_vm0, %v2900_v37, -inf }
 0x2af   : > { %v828_v62 = vpop.permute.xlu2 %827  ;;  %v1023_v19 = vpop.permute.xlu1 %1022 }
 0x2b0   : > { %1902 = vmatpush.xpose.msk.msrb.mxu2 %vm789_vm6, %v828_v62 }
 0x2b5   : > { %1564 = vrot.lane.b32.xlu2 %v2885_v29, %s2264_s25 }
 0x2b7   : > { %v865_v52 = vpop.permute.xlu2 %864  ;;  %v1296_v4 = vpop.permute.xlu1 %1295 }
 0x2b8   : > { %v1060_v63 = vpop.permute.xlu0 %1059 }
 0x2bf   : > { %v943_v25 = vpop.permute.xlu2 %942 }
 0x2c0   : > { %v826_v5 = vpop.permute.xlu1 %825  ;;  %v867_v7 = vpop.permute.xlu0 %866 }
 0x2c1   : > { %1903 = vmatpush.xpose.msk.msrb.mxu2 %vm789_vm6, %v826_v5  ;;  %1906 = vmatpush.xpose.msk.msra.mxu3 %vm789_vm6, %v867_v7 }
 0x2c4   : > { %1904 = vmatmul.msk.f32.vlgmr.msrb.gmra.mxu2 %vm789_vm6, %v2813_v38 }
 0x2c5   : > { %1907 = vmatpush.xpose.msk.msra.mxu3 %vm789_vm6, %v865_v52 }
 0x2c7   : > { %v982_v55 = vpop.permute.xlu2 %981 }
 0x2c8   : > { %v1335_v8 = vpop.permute.xlu1 %1334  ;;  %1908 = vmatmul.msk.f32.vlgmr.msra.gmra.mxu3 %vm789_vm6, %v771_v15  ;;  %v904_v47 = vpop.permute.xlu0 %903 }
 0x2cc   : > { %1905 = vmatmul.msk.f32.gmra.mxu2 %vm789_vm6, %v770_v44 }
 0x2cf   : > { %v1374_v10 = vpop.permute.xlu2 %1373 }
 0x2d0   : > { %v906_v11 = vpop.permute.xlu1 %905  ;;  %1909 = vmatmul.msk.f32.gmra.mxu3 %vm789_vm6, %v772_v50  ;;  %v1292_v12 = vpop.permute.xlu0 %1291 }
 0x2d1   : > { %1910 = vmatpush.xpose.msk.msrb.mxu1 %vm789_vm6, %v906_v11 }
 0x2d5   : > { %1911 = vmatpush.xpose.msk.msrb.mxu1 %vm789_vm6, %v904_v47 }
 0x2d7   : > { %1101 = vmax.xlane.f32.xlu0 %v1100_v2  ;;  %v1411_v16 = vpop.permute.xlu2 %1410 }
 0x2d8   : > { %v1329_v20 = vpop.permute.xlu1 %1328  ;;  %1098 = vmax.xlane.f32.xlu1 %v1097_v3  ;;  %1912 = vmatmul.msk.f32.vlgmr.msrb.gmra.mxu1 %vm789_vm6, %v2832_v42  ;;  %v1372_v26 = vpop.permute.xlu0 %1371 }
 0x2d9   : > { %1922 = vmatpush.xpose.msk.msra.mxu1 %vm789_vm6, %v1023_v19 }
 0x2df   : > { %v1368_v46 = vpop.permute.xlu2 %1367 }
 0x2e0   : > { %v945_v14 = vpop.permute.xlu1 %944  ;;  %1913 = vmatmul.msk.f32.gmra.mxu1 %vm789_vm6, %v2840_v45  ;;  %v984_v0 = vpop.permute.xlu0 %983 }
 0x2e1   : > { %1914 = vmatpush.xpose.msk.msra.mxu2 %vm789_vm6, %v945_v14  ;;  %1918 = vmatpush.xpose.msk.msrb.mxu3 %vm789_vm6, %v984_v0 }
 0x2e5   : > { %1915 = vmatpush.xpose.msk.msra.mxu2 %vm789_vm6, %v943_v25  ;;  %1919 = vmatpush.xpose.msk.msrb.mxu3 %vm789_vm6, %v982_v55 }
 0x2e7   : > { %v1446_v23 = vpop.permute.xlu2 %1445 }
 0x2e8   : > { %1916 = vmatmul.msk.f32.vlgmr.msra.gmra.mxu2 %vm789_vm6, %v2838_v32  ;;  %v1413_v18 = vpop.permute.xlu1 %1412  ;;  %1920 = vmatmul.msk.f32.vlgmr.msrb.gmra.mxu3 %vm789_vm6, %v777_v24  ;;  %v1021_v21 = vpop.permute.xlu0 %1020 }
 0x2e9   : > { %1926 = vmatpush.xpose.msk.msrb.mxu2 %vm789_vm6, %v1062_v59  ;;  %1930 = vmatpush.xpose.msk.msra.mxu3 %vm789_vm6, %v1296_v4 }
 0x2ea   : > { %1923 = vmatpush.xpose.msk.msra.mxu1 %vm789_vm6, %v1021_v21 }
 0x2ed   : > { %1927 = vmatpush.xpose.msk.msrb.mxu2 %vm789_vm6, %v1060_v63  ;;  %1931 = vmatpush.xpose.msk.msra.mxu3 %vm789_vm6, %v2847_v49 }
 0x2ee   : > { %1934 = vmatpush.xpose.msk.msrb.mxu1 %vm789_vm6, %v1335_v8 }
 0x2ef   : > { %1924 = vmatmul.msk.f32.vlgmr.msra.gmra.mxu1 %vm789_vm6, %v2862_v57  ;;  %v1491_v28 = vpop.permute.xlu2 %1490 }
 0x2f0   : > { %1917 = vmatmul.msk.f32.gmra.mxu2 %vm789_vm6, %v2853_v51  ;;  %v1331_v31 = vpop.permute.xlu1 %1330  ;;  %v1452_v22 = vpop.permute.xlu0 %1451  ;;  %1921 = vmatmul.msk.f32.gmra.mxu3 %vm789_vm6, %v2875_v60 }
 0x2f1   : > { %1938 = vmatpush.xpose.msk.msra.mxu2 %vm789_vm6, %v1374_v10  ;;  %1942 = vmatpush.xpose.msk.msrb.mxu3 %vm789_vm6, %v1413_v18 }
 0x2f2   : > { %1935 = vmatpush.xpose.msk.msrb.mxu1 %vm789_vm6, %v2860_v53 }
 0x2f5   : > { %1939 = vmatpush.xpose.msk.msra.mxu2 %vm789_vm6, %v1372_v26  ;;  %1943 = vmatpush.xpose.msk.msrb.mxu3 %vm789_vm6, %v1411_v16 }
 0x2f6   : > { %1946 = vmatpush.xpose.msk.msra.mxu1 %vm789_vm6, %v1452_v22 }
 0x2f7   : > { %1925 = vmatmul.msk.f32.gmra.mxu1 %vm789_vm6, %v2873_v58  ;;  %v1528_v39 = vpop.permute.xlu2 %1527 }
 0x2f8   : > { %v1407_v6 = vpop.permute.xlu1 %1406  ;;  %1928 = vmatmul.msk.f32.vlgmr.msrb.gmra.mxu2 %vm789_vm6, %v2870_v48  ;;  %v1450_v33 = vpop.permute.xlu0 %1449  ;;  %1932 = vmatmul.msk.f32.vlgmr.msra.gmra.mxu3 %vm789_vm6, %v2772_v13 }
 0x2f9   : > { %1950 = vmatpush.xpose.msk.msrb.mxu2 %vm789_vm6, %v1491_v28 }
 0x2fa   : > { %1947 = vmatpush.xpose.msk.msra.mxu1 %vm789_vm6, %v1450_v33 }
 0x2ff   : > { %1936 = vmatmul.msk.f32.vlgmr.msrb.gmra.mxu1 %vm789_vm6, %v1329_v20  ;;  %v1485_v35 = vpop.permute.xlu2 %1484 }
 0x300   : > { %v1370_v54 = vpop.permute.xlu1 %1369  ;;  %1929 = vmatmul.msk.f32.gmra.mxu2 %vm789_vm6, %v2885_v29  ;;  %v1409_v27 = vpop.permute.xlu0 %1408  ;;  %1933 = vmatmul.msk.f32.gmra.mxu3 %vm789_vm6, %v1292_v12 }
 0x307   : > { %1937 = vmatmul.msk.f32.gmra.mxu1 %vm789_vm6, %v1331_v31  ;;  %v1563_v61 = vpop.permute.xlu2 %1562 }
 0x308   : > { %v1530_v1 = vpop.permute.xlu1 %1529  ;;  %1940 = vmatmul.msk.f32.vlgmr.msra.gmra.mxu2 %vm789_vm6, %v1368_v46  ;;  %v1489_v13 = vpop.permute.xlu0 %1488  ;;  %1944 = vmatmul.msk.f32.vlgmr.msrb.gmra.mxu3 %vm789_vm6, %v1407_v6 }
 0x309   : > { %1951 = vmatpush.xpose.msk.msrb.mxu2 %vm789_vm6, %v1489_v13  ;;  %1954 = vmatpush.xpose.msk.msra.mxu3 %vm789_vm6, %v1530_v1 }
 0x30d   : > { %1955 = vmatpush.xpose.msk.msra.mxu3 %vm789_vm6, %v1528_v39 }
 0x30f   : > { %1948 = vmatmul.msk.f32.vlgmr.msra.gmra.mxu1 %vm789_vm6, %v1446_v23  ;;  %v1565_v41 = vpop.permute.xlu2 %1564 }
 0x310   : > { %v1448_v17 = vpop.permute.xlu1 %1447  ;;  %1941 = vmatmul.msk.f32.gmra.mxu2 %vm789_vm6, %v1370_v54  ;;  %v1569_v56 = vpop.permute.xlu0 %1568  ;;  %1945 = vmatmul.msk.f32.gmra.mxu3 %vm789_vm6, %v1409_v27 }
 0x311   : > { %1958 = vmatpush.xpose.msk.msrb.mxu1 %vm789_vm6, %v1569_v56 }
 0x317   : > { %1949 = vmatmul.msk.f32.gmra.mxu1 %vm789_vm6, %v1448_v17 }
 0x318   : > { %v1524_v30 = vpop.permute.xlu1 %1523  ;;  %1952 = vmatmul.msk.f32.vlgmr.msrb.gmra.mxu2 %vm789_vm6, %v1485_v35  ;;  %v1567_v38 = vpop.permute.xlu0 %1566 }
 0x319   : > { %1956 = vmatmul.msk.f32.vlgmr.msra.gmra.mxu3 %vm789_vm6, %v1524_v30  ;;  %1959 = vmatpush.xpose.msk.msrb.mxu1 %vm789_vm6, %v1567_v38 }
 0x31f   : > { %1960 = vmatmul.msk.f32.vlgmr.msrb.gmra.mxu1 %vm789_vm6, %v1563_v61 }
 0x320   : > { %v1487_v36 = vpop.permute.xlu1 %1486  ;;  %v1526_v40 = vpop.permute.xlu0 %1525 }
 0x321   : > { %1953 = vmatmul.msk.f32.gmra.mxu2 %vm789_vm6, %v1487_v36  ;;  %1957 = vmatmul.msk.f32.gmra.mxu3 %vm789_vm6, %v1526_v40 }
 0x327   : > { %1961 = vmatmul.msk.f32.gmra.mxu1 %vm789_vm6, %v1565_v41 }
 0x347   : > { %v2969_v34 = vpop.f32.mrf.mxu2 }
 0x348   : > { %v1103_v43 = vsel %vm1096_vm0, %v2969_v34, -inf }
 0x349   : > { %1104 = vmax.xlane.f32.xlu2 %v1103_v43 }
 0x34a   : > { %v1102_v1 = vpop.xlane.xlu0 %1101 }
 0x34b   : > { %v2973_v44 = vpop.f32.mrf.mxu3  ;;  %v1099_v31 = vpop.xlane.xlu1 %1098 }
 0x34c   : > { %v1109_v15 = vsel %vm1096_vm0, %v2973_v44, -inf  ;;  %v1145_v28 = vsub.f32 %v2895_v9, %v1099_v31  ;;  %v1146_v9 = vsub.f32 %v2900_v37, %v1102_v1 }
 0x34d   : > { %1110 = vmax.xlane.f32.xlu0 %v1109_v15 }
 0x34e   : > { %v1161_v39 = vmul.f32 1.442695, %v1145_v28  ;;  %v1163_v38 = vmul.f32 1.442695, %v1146_v9 }
 0x34f   : > { %v2977_v42 = vpop.f32.mrf.mxu2 }
 0x350   : > { %v1106_v32 = vsel %vm1096_vm0, %v2977_v42, -inf  ;;  %2070 = vpow2.f32 %v1161_v39 }
 0x351   : > { %1107 = vmax.xlane.f32.xlu1 %v1106_v32  ;;  %2072 = vpow2.f32 %v1163_v38 }
 0x353   : > { %v2981_v45 = vpop.f32.mrf.mxu3 }
 0x354   : > { %v1112_v50 = vsel %vm1096_vm0, %v2981_v45, -inf }
 0x355   : > { %1113 = vmax.xlane.f32.xlu2 %v1112_v50  ;;  %v2985_v49 = vpop.f32.mrf.mxu1 }
 0x356   : > { %v1115_v51 = vsel %vm1096_vm0, %v2985_v49, -inf  ;;  %v3079_v36 = vpop.eup %2070 }
 0x357   : > { %v1193_v41 = vsel %vm1096_vm0, %v3079_v36, 0.0  ;;  %v3089_v15 = vpop.eup %2072 }
 0x358   : > { %v1196_v32 = vsel %vm1096_vm0, %v3089_v15, 0.0 }
 0x359   : > { %1116 = vmax.xlane.f32.xlu1 %v1115_v51 }
 0x35d   : > { %v2989_v53 = vpop.f32.mrf.mxu1 }
 0x35e   : > { %v1118_v24 = vsel %vm1096_vm0, %v2989_v53, -inf }
 0x35f   : > { %1119 = vmax.xlane.f32.xlu0 %v1118_v24 }
 0x36b   : > { %v2995_v59 = vpop.f32.mrf.mxu2  ;;  %v2997_v48 = vpop.f32.mrf.mxu3 }
 0x36c   : > { %v2993_v57 = vpop.f32.mrf.mxu1  ;;  %v1121_v58 = vsel %vm1096_vm0, %v2995_v59, -inf  ;;  %v1127_v60 = vsel %vm1096_vm0, %v2997_v48, -inf }
 0x36d   : > { %1122 = vmax.xlane.f32.xlu2 %v1121_v58  ;;  %1128 = vmax.xlane.f32.xlu0 %v1127_v60  ;;  %v1133_v55 = vsel %vm1096_vm0, %v2993_v57, -inf }
 0x373   : > { %v3005_v19 = vpop.f32.mrf.mxu2  ;;  %v3007_v29 = vpop.f32.mrf.mxu3 }
 0x374   : > { %v3003_v62 = vpop.f32.mrf.mxu1  ;;  %v1124_v52 = vsel %vm1096_vm0, %v3005_v19, -inf  ;;  %v1130_v11 = vsel %vm1096_vm0, %v3007_v29, -inf }
 0x375   : > { %v1136_v4 = vsel %vm1096_vm0, %v3003_v62, -inf  ;;  %1125 = vmax.xlane.f32.xlu1 %v1124_v52 }
 0x376   : > { %1137 = vmax.xlane.f32.xlu0 %v1136_v4 }
 0x37b   : > { %v3015_v25 = vpop.f32.mrf.mxu2  ;;  %v3017_v5 = vpop.f32.mrf.mxu3 }
 0x37c   : > { %v3013_v63 = vpop.f32.mrf.mxu1  ;;  %v1139_v7 = vsel %vm1096_vm0, %v3015_v25, -inf  ;;  %v1601_v20 = vsel %vm1096_vm0, %v3017_v5, -inf }
 0x37d   : > { %1140 = vmax.xlane.f32.xlu2 %v1139_v7  ;;  %1134 = vmax.xlane.f32.xlu1 %v1133_v55  ;;  %v1607_v8 = vsel %vm1096_vm0, %v3013_v63, -inf }
 0x37e   : > { %1608 = vmax.xlane.f32.xlu0 %v1607_v8 }
 0x383   : > { %v3025_v47 = vpop.f32.mrf.mxu2  ;;  %v3027_v10 = vpop.f32.mrf.mxu3 }
 0x384   : > { %v1142_v12 = vsel %vm1096_vm0, %v3025_v47, -inf  ;;  %v3041_v16 = vpop.f32.mrf.mxu1  ;;  %v1604_v0 = vsel %vm1096_vm0, %v3027_v10, -inf }
 0x385   : > { %1131 = vmax.xlane.f32.xlu2 %v1130_v11  ;;  %1143 = vmax.xlane.f32.xlu1 %v1142_v12  ;;  %v1610_v46 = vsel %vm1096_vm0, %v3041_v16, -inf }
 0x38b   : > { %v3033_v2 = vpop.f32.mrf.mxu2  ;;  %v3035_v3 = vpop.f32.mrf.mxu3 }
 0x38c   : > { %v1613_v26 = vsel %vm1096_vm0, %v3033_v2, -inf  ;;  %v3053_v23 = vpop.f32.mrf.mxu1  ;;  %v1619_v6 = vsel %vm1096_vm0, %v3035_v3, -inf }
 0x38d   : > { %1602 = vmax.xlane.f32.xlu2 %v1601_v20  ;;  %1614 = vmax.xlane.f32.xlu1 %v1613_v26  ;;  %v1625_v54 = vsel %vm1096_vm0, %v3053_v23, -inf }
 0x393   : > { %v3043_v14 = vpop.f32.mrf.mxu2  ;;  %v3051_v21 = vpop.f32.mrf.mxu3 }
 0x394   : > { %v1616_v18 = vsel %vm1096_vm0, %v3043_v14, -inf  ;;  %v3066_v13 = vpop.f32.mrf.mxu1  ;;  %v1622_v56 = vsel %vm1096_vm0, %v3051_v21, -inf }
 0x395   : > { %1605 = vmax.xlane.f32.xlu1 %v1604_v0  ;;  %1611 = vmax.xlane.f32.xlu2 %v1610_v46  ;;  %v1628_v17 = vsel %vm1096_vm0, %v3066_v13, -inf }
 0x396   : > { %1617 = vmax.xlane.f32.xlu0 %v1616_v18 }
 0x39b   : > { %v3055_v22 = vpop.f32.mrf.mxu2 }
 0x39c   : > { %v1631_v33 = vsel %vm1096_vm0, %v3055_v22, -inf  ;;  %v3064_v27 = vpop.f32.mrf.mxu3  ;;  %v3087_v43 = vpop.f32.mrf.mxu1 }
 0x39d   : > { %1620 = vmax.xlane.f32.xlu2 %v1619_v6  ;;  %1632 = vmax.xlane.f32.xlu1 %v1631_v33  ;;  %v1637_v37 = vsel %vm1096_vm0, %v3064_v27, -inf  ;;  %v1643_v50 = vsel %vm1096_vm0, %v3087_v43, -inf }
 0x39e   : > { %1626 = vmax.xlane.f32.xlu0 %v1625_v54 }
 0x3a4   : > { %v3069_v35 = vpop.f32.mrf.mxu2  ;;  %v3077_v61 = vpop.f32.mrf.mxu3 }
 0x3a5   : > { %1629 = vmax.xlane.f32.xlu2 %v1628_v17  ;;  %1623 = vmax.xlane.f32.xlu1 %v1622_v56  ;;  %v1634_v30 = vsel %vm1096_vm0, %v3069_v35, -inf  ;;  %v1640_v40 = vsel %vm1096_vm0, %v3077_v61, -inf  ;;  %v3095_v51 = vpop.f32.mrf.mxu1 }
 0x3a6   : > { %1635 = vmax.xlane.f32.xlu0 %v1634_v30  ;;  %v1646_v58 = vsel %vm1096_vm0, %v3095_v51, -inf }
 0x3ad   : > { %1638 = vmax.xlane.f32.xlu2 %v1637_v37  ;;  %1641 = vmax.xlane.f32.xlu1 %v1640_v40 }
 0x3ae   : > { %1194 = vadd.xlane.f32.xlu0 %v1193_v41 }
 0x3b5   : > { %1197 = vadd.xlane.f32.xlu2 %v1196_v32 }
 0x3b6   : > { %1644 = vmax.xlane.f32.xlu0 %v1643_v50 }
 0x3bc   : > { %v1105_v24 = vpop.xlane.xlu2 %1104 }
 0x3bd   : > { %v1147_v60 = vsub.f32 %v2969_v34, %v1105_v24  ;;  %1647 = vmax.xlane.f32.xlu2 %v1646_v58 }
 0x3bf   : > { %v1165_v52 = vmul.f32 1.442695, %v1147_v60 }
 0x3c0   : > { %v1111_v4 = vpop.xlane.xlu0 %1110 }
 0x3c1   : > { %2074 = vpow2.f32 %v1165_v52  ;;  %v1149_v7 = vsub.f32 %v2973_v44, %v1111_v4 }
 0x3c3   : > { %v1169_v55 = vmul.f32 1.442695, %v1149_v7 }
 0x3c4   : > { %v1108_v8 = vpop.xlane.xlu1 %1107 }
 0x3c5   : > { %2076 = vpow2.f32 %v1169_v55  ;;  %v1148_v11 = vsub.f32 %v2977_v42, %v1108_v8 }
 0x3c7   : > { %v3102_v12 = vpop.eup %2074  ;;  %v1167_v20 = vmul.f32 1.442695, %v1148_v11 }
 0x3c8   : > { %v1114_v26 = vpop.xlane.xlu2 %1113  ;;  %v1199_v0 = vsel %vm1096_vm0, %v3102_v12, 0.0 }
 0x3c9   : > { %2078 = vpow2.f32 %v1167_v20  ;;  %v1150_v34 = vsub.f32 %v2981_v45, %v1114_v26  ;;  %1200 = vadd.xlane.f32.xlu1 %v1199_v0 }
 0x3cb   : > { %v3107_v46 = vpop.eup %2076  ;;  %v1171_v18 = vmul.f32 1.442695, %v1150_v34 }
 0x3cc   : > { %v1117_v44 = vpop.xlane.xlu1 %1116  ;;  %v1205_v31 = vsel %vm1096_vm0, %v3107_v46, 0.0 }
 0x3cd   : > { %2080 = vpow2.f32 %v1171_v18  ;;  %v1151_v42 = vsub.f32 %v2985_v49, %v1117_v44  ;;  %1206 = vadd.xlane.f32.xlu2 %v1205_v31 }
 0x3cf   : > { %v3112_v28 = vpop.eup %2078  ;;  %v1173_v6 = vmul.f32 1.442695, %v1151_v42 }
 0x3d0   : > { %v1202_v33 = vsel %vm1096_vm0, %v3112_v28, 0.0 }
 0x3d1   : > { %2082 = vpow2.f32 %v1173_v6  ;;  %1203 = vadd.xlane.f32.xlu0 %v1202_v33 }
 0x3d2   : > { %v1120_v45 = vpop.xlane.xlu0 %1119 }
 0x3d3   : > { %v3116_v54 = vpop.eup %2080  ;;  %v1152_v39 = vsub.f32 %v2989_v53, %v1120_v45 }
 0x3d4   : > { %v1208_v1 = vsel %vm1096_vm0, %v3116_v54, 0.0 }
 0x3d5   : > { %v1175_v9 = vmul.f32 1.442695, %v1152_v39  ;;  %1209 = vadd.xlane.f32.xlu1 %v1208_v1 }
 0x3d7   : > { %v3121_v49 = vpop.eup %2082  ;;  %2084 = vpow2.f32 %v1175_v9 }
 0x3d8   : > { %v1211_v17 = vsel %vm1096_vm0, %v3121_v49, 0.0 }
 0x3d9   : > { %1212 = vadd.xlane.f32.xlu0 %v1211_v17 }
 0x3dd   : > { %v3125_v56 = vpop.eup %2084 }
 0x3de   : > { %v1214_v30 = vsel %vm1096_vm0, %v3125_v56, 0.0 }
 0x3df   : > { %1215 = vadd.xlane.f32.xlu2 %v1214_v30 }
 0x3e0   : > { %v1123_v38 = vpop.xlane.xlu2 %1122  ;;  %v1129_v53 = vpop.xlane.xlu0 %1128 }
 0x3e1   : > { %v1153_v37 = vsub.f32 %v2995_v59, %v1123_v38  ;;  %v1155_v40 = vsub.f32 %v2997_v48, %v1129_v53 }
 0x3e3   : > { %v1177_v41 = vmul.f32 1.442695, %v1153_v37  ;;  %v1181_v32 = vmul.f32 1.442695, %v1155_v40 }
 0x3e5   : > { %2086 = vpow2.f32 %v1177_v41 }
 0x3e6   : > { %2088 = vpow2.f32 %v1181_v32 }
 0x3e8   : > { %v1126_v50 = vpop.xlane.xlu1 %1125 }
 0x3e9   : > { %v1138_v24 = vpop.xlane.xlu0 %1137  ;;  %v1154_v58 = vsub.f32 %v3005_v19, %v1126_v50 }
 0x3ea   : > { %v1158_v60 = vsub.f32 %v3003_v62, %v1138_v24 }
 0x3eb   : > { %v3133_v52 = vpop.eup %2086  ;;  %v1179_v4 = vmul.f32 1.442695, %v1154_v58 }
 0x3ec   : > { %v1187_v7 = vmul.f32 1.442695, %v1158_v60  ;;  %v3135_v55 = vpop.eup %2088  ;;  %v1217_v59 = vsel %vm1096_vm0, %v3133_v52, 0.0 }
 0x3ed   : > { %2090 = vpow2.f32 %v1179_v4  ;;  %1218 = vadd.xlane.f32.xlu1 %v1217_v59  ;;  %v1223_v48 = vsel %vm1096_vm0, %v3135_v55, 0.0 }
 0x3ee   : > { %2092 = vpow2.f32 %v1187_v7  ;;  %1224 = vadd.xlane.f32.xlu2 %v1223_v48 }
 0x3f0   : > { %v1141_v8 = vpop.xlane.xlu2 %1140  ;;  %v1135_v19 = vpop.xlane.xlu1 %1134 }
 0x3f1   : > { %v1159_v62 = vsub.f32 %v3015_v25, %v1141_v8  ;;  %v1157_v11 = vsub.f32 %v2993_v57, %v1135_v19  ;;  %v1609_v20 = vpop.xlane.xlu0 %1608 }
 0x3f2   : > { %v1651_v26 = vsub.f32 %v3013_v63, %v1609_v20 }
 0x3f3   : > { %v3144_v0 = vpop.eup %2090  ;;  %v1189_v34 = vmul.f32 1.442695, %v1159_v62  ;;  %v1185_v18 = vmul.f32 1.442695, %v1157_v11 }
 0x3f4   : > { %v3146_v44 = vpop.eup %2092  ;;  %v1669_v31 = vmul.f32 1.442695, %v1651_v26  ;;  %v1220_v42 = vsel %vm1096_vm0, %v3144_v0, 0.0 }
 0x3f5   : > { %2094 = vpow2.f32 %v1189_v34  ;;  %1221 = vadd.xlane.f32.xlu0 %v1220_v42  ;;  %v1232_v25 = vsel %vm1096_vm0, %v3146_v44, 0.0 }
 0x3f6   : > { %2096 = vpow2.f32 %v1185_v18  ;;  %1233 = vadd.xlane.f32.xlu2 %v1232_v25 }
 0x3f7   : > { %2098 = vpow2.f32 %v1669_v31 }
 0x3f8   : > { %v1132_v57 = vpop.xlane.xlu2 %1131  ;;  %v1144_v63 = vpop.xlane.xlu1 %1143 }
 0x3f9   : > { %v1156_v6 = vsub.f32 %v3007_v29, %v1132_v57  ;;  %v1160_v33 = vsub.f32 %v3025_v47, %v1144_v63 }
 0x3fb   : > { %v3154_v45 = vpop.eup %2094  ;;  %v1183_v39 = vmul.f32 1.442695, %v1156_v6  ;;  %v1191_v1 = vmul.f32 1.442695, %v1160_v33 }
 0x3fc   : > { %v3156_v9 = vpop.eup %2096  ;;  %v1235_v17 = vsel %vm1096_vm0, %v3154_v45, 0.0 }
 0x3fd   : > { %v3160_v30 = vpop.eup %2098  ;;  %2100 = vpow2.f32 %v1183_v39  ;;  %v1229_v38 = vsel %vm1096_vm0, %v3156_v9, 0.0  ;;  %1236 = vadd.xlane.f32.xlu1 %v1235_v17 }
 0x3fe   : > { %2102 = vpow2.f32 %v1191_v1  ;;  %1230 = vadd.xlane.f32.xlu0 %v1229_v38  ;;  %v1703_v29 = vsel %vm1096_vm0, %v3160_v30, 0.0 }
 0x3ff   : > { %1704 = vadd.xlane.f32.xlu2 %v1703_v29 }
 0x400   : > { %v1603_v47 = vpop.xlane.xlu2 %1602  ;;  %v1615_v53 = vpop.xlane.xlu1 %1614 }
 0x401   : > { %v1649_v37 = vsub.f32 %v3017_v5, %v1603_v47  ;;  %v1653_v40 = vsub.f32 %v3033_v2, %v1615_v53 }
 0x403   : > { %v3168_v41 = vpop.eup %2100  ;;  %v1665_v32 = vmul.f32 1.442695, %v1649_v37  ;;  %v1673_v50 = vmul.f32 1.442695, %v1653_v40 }
 0x404   : > { %v3170_v24 = vpop.eup %2102  ;;  %v1226_v58 = vsel %vm1096_vm0, %v3168_v41, 0.0 }
 0x405   : > { %2104 = vpow2.f32 %v1665_v32  ;;  %v1238_v60 = vsel %vm1096_vm0, %v3170_v24, 0.0  ;;  %1227 = vadd.xlane.f32.xlu1 %v1226_v58 }
 0x406   : > { %2106 = vpow2.f32 %v1673_v50  ;;  %1239 = vadd.xlane.f32.xlu0 %v1238_v60 }
 0x408   : > { %v1606_v4 = vpop.xlane.xlu1 %1605  ;;  %v1612_v5 = vpop.xlane.xlu2 %1611 }
 0x409   : > { %v1650_v2 = vsub.f32 %v3027_v10, %v1606_v4  ;;  %v1652_v7 = vsub.f32 %v3041_v16, %v1612_v5  ;;  %v1618_v59 = vpop.xlane.xlu0 %1617 }
 0x40a   : > { %v1654_v48 = vsub.f32 %v3043_v14, %v1618_v59 }
 0x40b   : > { %v3179_v8 = vpop.eup %2104  ;;  %v1667_v19 = vmul.f32 1.442695, %v1650_v2  ;;  %v1671_v62 = vmul.f32 1.442695, %v1652_v7 }
 0x40c   : > { %v3181_v11 = vpop.eup %2106  ;;  %v1675_v20 = vmul.f32 1.442695, %v1654_v48  ;;  %v1697_v26 = vsel %vm1096_vm0, %v3179_v8, 0.0 }
 0x40d   : > { %2108 = vpow2.f32 %v1667_v19  ;;  %v1709_v34 = vsel %vm1096_vm0, %v3181_v11, 0.0  ;;  %1698 = vadd.xlane.f32.xlu1 %v1697_v26 }
 0x40e   : > { %2110 = vpow2.f32 %v1671_v62  ;;  %1710 = vadd.xlane.f32.xlu0 %v1709_v34 }
 0x40f   : > { %2112 = vpow2.f32 %v1675_v20 }
 0x410   : > { %v1621_v10 = vpop.xlane.xlu2 %1620  ;;  %v1633_v16 = vpop.xlane.xlu1 %1632 }
 0x411   : > { %v1655_v14 = vsub.f32 %v3035_v3, %v1621_v10  ;;  %v1659_v18 = vsub.f32 %v3055_v22, %v1633_v16  ;;  %v1627_v31 = vpop.xlane.xlu0 %1626 }
 0x412   : > { %v1657_v42 = vsub.f32 %v3053_v23, %v1627_v31 }
 0x413   : > { %v3190_v25 = vpop.eup %2108  ;;  %v1677_v57 = vmul.f32 1.442695, %v1655_v14  ;;  %v1685_v63 = vmul.f32 1.442695, %v1659_v18 }
 0x414   : > { %v3192_v6 = vpop.eup %2110  ;;  %v1681_v33 = vmul.f32 1.442695, %v1657_v42  ;;  %v1700_v39 = vsel %vm1096_vm0, %v3190_v25, 0.0 }
 0x415   : > { %v3196_v1 = vpop.eup %2112  ;;  %2114 = vpow2.f32 %v1677_v57  ;;  %v1706_v3 = vsel %vm1096_vm0, %v3192_v6, 0.0 }
 0x416   : > { %2116 = vpow2.f32 %v1685_v63  ;;  %1701 = vadd.xlane.f32.xlu0 %v1700_v39  ;;  %1707 = vadd.xlane.f32.xlu1 %v1706_v3  ;;  %v1712_v23 = vsel %vm1096_vm0, %v3196_v1, 0.0 }
 0x417   : > { %2118 = vpow2.f32 %v1681_v33  ;;  %1713 = vadd.xlane.f32.xlu2 %v1712_v23 }
 0x418   : > { %v1630_v22 = vpop.xlane.xlu2 %1629  ;;  %v1624_v17 = vpop.xlane.xlu1 %1623 }
 0x419   : > { %v1658_v38 = vsub.f32 %v3066_v13, %v1630_v22  ;;  %v1656_v29 = vsub.f32 %v3051_v21, %v1624_v17  ;;  %v1636_v47 = vpop.xlane.xlu0 %1635 }
 0x41a   : > { %v1660_v53 = vsub.f32 %v3069_v35, %v1636_v47 }
 0x41b   : > { %v3205_v37 = vpop.eup %2114  ;;  %v1683_v40 = vmul.f32 1.442695, %v1658_v38  ;;  %v1679_v32 = vmul.f32 1.442695, %v1656_v29 }
 0x41c   : > { %v3207_v50 = vpop.eup %2116  ;;  %v1687_v58 = vmul.f32 1.442695, %v1660_v53  ;;  %v1715_v60 = vsel %vm1096_vm0, %v3205_v37, 0.0 }
 0x41d   : > { %v3211_v4 = vpop.eup %2118  ;;  %2120 = vpow2.f32 %v1683_v40  ;;  %v1727_v21 = vsel %vm1096_vm0, %v3207_v50, 0.0 }
 0x41e   : > { %2122 = vpow2.f32 %v1679_v32  ;;  %1728 = vadd.xlane.f32.xlu0 %v1727_v21  ;;  %1716 = vadd.xlane.f32.xlu1 %v1715_v60  ;;  %v1721_v13 = vsel %vm1096_vm0, %v3211_v4, 0.0 }
 0x41f   : > { %2124 = vpow2.f32 %v1687_v58  ;;  %1722 = vadd.xlane.f32.xlu2 %v1721_v13 }
 0x420   : > { %v1639_v35 = vpop.xlane.xlu2 %1638  ;;  %v1642_v5 = vpop.xlane.xlu1 %1641 }
 0x421   : > { %v1661_v2 = vsub.f32 %v3064_v27, %v1639_v35  ;;  %v1662_v7 = vsub.f32 %v3077_v61, %v1642_v5  ;;  %v1195_v59 = vpop.xlane.xlu0 %1194 }
 0x422   : > { %2126 = vrcp.f32 %v1195_v59 }
 0x423   : > { %v3220_v48 = vpop.eup %2120  ;;  %v1689_v19 = vmul.f32 1.442695, %v1661_v2  ;;  %v1691_v62 = vmul.f32 1.442695, %v1662_v7 }
 0x424   : > { %v3222_v20 = vpop.eup %2122  ;;  %v1724_v26 = vsel %vm1096_vm0, %v3220_v48, 0.0 }
 0x425   : > { %v3226_v34 = vpop.eup %2124  ;;  %2128 = vpow2.f32 %v1689_v19  ;;  %v1718_v27 = vsel %vm1096_vm0, %v3222_v20, 0.0 }
 0x426   : > { %2130 = vpow2.f32 %v1691_v62  ;;  %1719 = vadd.xlane.f32.xlu0 %v1718_v27  ;;  %1725 = vadd.xlane.f32.xlu1 %v1724_v26  ;;  %v1730_v61 = vsel %vm1096_vm0, %v3226_v34, 0.0 }
 0x427   : > { %1731 = vadd.xlane.f32.xlu2 %v1730_v61 }
 0x428   : > { %v2127_v10 = vpop.eup %2126  ;;  %v1198_v16 = vpop.xlane.xlu2 %1197 }
 0x429   : > { %v1257_v14 = vmul.f32 %v2127_v10, %v3079_v36  ;;  %2132 = vrcp.f32 %v1198_v16  ;;  %v1645_v18 = vpop.xlane.xlu0 %1644 }
 0x42a   : > { %v1663_v31 = vsub.f32 %v3087_v43, %v1645_v18 }
 0x42b   : > { %v3236_v42 = vpop.eup %2128  ;;  %1273 = vst.msk [vmem:[%s3238_s7] sm:$0xff] %vm1096_vm0, %v1257_v14 }
 0x42c   : > { %v3242_v57 = vpop.eup %2130  ;;  %v1693_v63 = vmul.f32 1.442695, %v1663_v31  ;;  %v1733_v33 = vsel %vm1096_vm0, %v3236_v42, 0.0 }
 0x42d   : > { %v1736_v36 = vsel %vm1096_vm0, %v3242_v57, 0.0 }
 0x42e   : > { %2134 = vpow2.f32 %v1693_v63  ;;  %1734 = vadd.xlane.f32.xlu1 %v1733_v33  ;;  %1737 = vadd.xlane.f32.xlu0 %v1736_v36 }
 0x42f   : > { %v2133_v43 = vpop.eup %2132 }
 0x430   : > { %v1258_v39 = vmul.f32 %v2133_v43, %v3089_v15  ;;  %v1648_v3 = vpop.xlane.xlu2 %1647 }
 0x431   : > { %v1664_v23 = vsub.f32 %v3095_v51, %v1648_v3 }
 0x432   : > { %1274 = vst.msk [vmem:[%s3238_s7 + $0x8] sm:$0xff] %vm1096_vm0, %v1258_v39 }
 0x433   : > { %v1695_v22 = vmul.f32 1.442695, %v1664_v23 }
 0x434   : > { %v3252_v17 = vpop.eup %2134 }
 0x435   : > { %2136 = vpow2.f32 %v1695_v22  ;;  %v1739_v38 = vsel %vm1096_vm0, %v3252_v17, 0.0 }
 0x436   : > { %1740 = vadd.xlane.f32.xlu2 %v1739_v38 }
 0x43b   : > { %v3256_v29 = vpop.eup %2136 }
 0x43c   : > { %v1201_v47 = vpop.xlane.xlu1 %1200  ;;  %v1742_v15 = vsel %vm1096_vm0, %v3256_v29, 0.0 }
 0x43d   : > { %2138 = vrcp.f32 %v1201_v47  ;;  %1743 = vadd.xlane.f32.xlu1 %v1742_v15 }
 0x440   : > { %v1207_v51 = vpop.xlane.xlu2 %1206 }
 0x441   : > { %2140 = vrcp.f32 %v1207_v51 }
 0x443   : > { %v2139_v53 = vpop.eup %2138 }
 0x444   : > { %v1259_v40 = vmul.f32 %v2139_v53, %v3102_v12  ;;  %v1204_v32 = vpop.xlane.xlu0 %1203 }
 0x445   : > { %2142 = vrcp.f32 %v1204_v32 }
 0x446   : > { %1275 = vst.msk [vmem:[%s3238_s7 + $0x20] sm:$0xff] %vm1096_vm0, %v1259_v40 }
 0x447   : > { %v2141_v58 = vpop.eup %2140 }
 0x448   : > { %v1261_v60 = vmul.f32 %v2141_v58, %v3107_v46  ;;  %v1210_v21 = vpop.xlane.xlu1 %1209 }
 0x449   : > { %2144 = vrcp.f32 %v1210_v21 }
 0x44a   : > { %1277 = vst.msk [vmem:[%s3238_s7 + $0x40] sm:$0xff] %vm1096_vm0, %v1261_v60 }
 0x44b   : > { %v2143_v13 = vpop.eup %2142 }
 0x44c   : > { %v1260_v35 = vmul.f32 %v2143_v13, %v3112_v28  ;;  %v1213_v5 = vpop.xlane.xlu0 %1212 }
 0x44d   : > { %2146 = vrcp.f32 %v1213_v5 }
 0x44e   : > { %1276 = vst.msk [vmem:[%s3238_s7 + $0x28] sm:$0xff] %vm1096_vm0, %v1260_v35 }
 0x44f   : > { %v2145_v12 = vpop.eup %2144 }
 0x450   : > { %v1262_v2 = vmul.f32 %v2145_v12, %v3116_v54 }
 0x452   : > { %1278 = vst.msk [vmem:[%s3238_s7 + $0x48] sm:$0xff] %vm1096_vm0, %v1262_v2  ;;  %v1216_v7 = vpop.xlane.xlu2 %1215 }
 0x453   : > { %v2147_v46 = vpop.eup %2146  ;;  %2148 = vrcp.f32 %v1216_v7 }
 0x454   : > { %v1263_v59 = vmul.f32 %v2147_v46, %v3121_v49 }
 0x456   : > { %1279 = vst.msk [vmem:[%s3238_s7 + $0x60] sm:$0xff] %vm1096_vm0, %v1263_v59 }
 0x459   : > { %v2149_v19 = vpop.eup %2148 }
 0x45a   : > { %v1264_v28 = vmul.f32 %v2149_v19, %v3125_v56 }
 0x45c   : > { %1280 = vst.msk [vmem:[%s3238_s7 + $0x68] sm:$0xff] %vm1096_vm0, %v1264_v28 }
 0x460   : > { %v1219_v62 = vpop.xlane.xlu1 %1218 }
 0x461   : > { %2150 = vrcp.f32 %v1219_v62  ;;  %v1225_v26 = vpop.xlane.xlu2 %1224 }
 0x462   : > { %2152 = vrcp.f32 %v1225_v26 }
 0x467   : > { %v2151_v54 = vpop.eup %2150 }
 0x468   : > { %v2153_v27 = vpop.eup %2152  ;;  %v1265_v61 = vmul.f32 %v2151_v54, %v3133_v52  ;;  %v1222_v10 = vpop.xlane.xlu0 %1221 }
 0x469   : > { %v1267_v49 = vmul.f32 %v2153_v27, %v3135_v55  ;;  %v1234_v16 = vpop.xlane.xlu2 %1233  ;;  %2154 = vrcp.f32 %v1222_v10 }
 0x46a   : > { %1281 = vst.msk [vmem:[%s3238_s7 + $0x80] sm:$0xff] %vm1096_vm0, %v1265_v61  ;;  %2156 = vrcp.f32 %v1234_v16 }
 0x46b   : > { %1283 = vst.msk [vmem:[%s3238_s7 + $0xa0] sm:$0xff] %vm1096_vm0, %v1267_v49 }
 0x46f   : > { %v2155_v56 = vpop.eup %2154 }
 0x470   : > { %v2157_v14 = vpop.eup %2156  ;;  %v1266_v18 = vmul.f32 %v2155_v56, %v3144_v0  ;;  %v1237_v31 = vpop.xlane.xlu1 %1236 }
 0x471   : > { %v1270_v63 = vmul.f32 %v2157_v14, %v3146_v44  ;;  %2158 = vrcp.f32 %v1237_v31  ;;  %v1231_v52 = vpop.xlane.xlu0 %1230 }
 0x472   : > { %1282 = vst.msk [vmem:[%s3238_s7 + $0x88] sm:$0xff] %vm1096_vm0, %v1266_v18  ;;  %v1705_v55 = vpop.xlane.xlu2 %1704  ;;  %2160 = vrcp.f32 %v1231_v52 }
 0x473   : > { %1286 = vst.msk [vmem:[%s3238_s7 + $0xc8] sm:$0xff] %vm1096_vm0, %v1270_v63  ;;  %2162 = vrcp.f32 %v1705_v55 }
 0x477   : > { %v2159_v33 = vpop.eup %2158 }
 0x478   : > { %v2161_v36 = vpop.eup %2160  ;;  %v1271_v43 = vmul.f32 %v2159_v33, %v3154_v45  ;;  %v1228_v0 = vpop.xlane.xlu1 %1227 }
 0x479   : > { %v2163_v39 = vpop.eup %2162  ;;  %v1269_v44 = vmul.f32 %v2161_v36, %v3156_v9  ;;  %2164 = vrcp.f32 %v1228_v0  ;;  %v1240_v3 = vpop.xlane.xlu0 %1239 }
 0x47a   : > { %1287 = vst.msk [vmem:[%s3238_s7 + $0xe0] sm:$0xff] %vm1096_vm0, %v1271_v43  ;;  %v1763_v23 = vmul.f32 %v2163_v39, %v3160_v30  ;;  %2166 = vrcp.f32 %v1240_v3 }
 0x47b   : > { %1285 = vst.msk [vmem:[%s3238_s7 + $0xc0] sm:$0xff] %vm1096_vm0, %v1269_v44 }
 0x47c   : > { %1964 = vst.msk [vmem:[%s3238_s7 + $0x30] sm:$0xff] %vm1096_vm0, %v1763_v23 }
 0x47f   : > { %v2165_v22 = vpop.eup %2164 }
 0x480   : > { %v2167_v45 = vpop.eup %2166  ;;  %v1268_v38 = vmul.f32 %v2165_v22, %v3168_v41  ;;  %v1699_v47 = vpop.xlane.xlu1 %1698 }
 0x481   : > { %v1272_v9 = vmul.f32 %v2167_v45, %v3170_v24  ;;  %2168 = vrcp.f32 %v1699_v47  ;;  %v1711_v15 = vpop.xlane.xlu0 %1710 }
 0x482   : > { %1284 = vst.msk [vmem:[%s3238_s7 + $0xa8] sm:$0xff] %vm1096_vm0, %v1268_v38  ;;  %2170 = vrcp.f32 %v1711_v15 }
 0x483   : > { %1288 = vst.msk [vmem:[%s3238_s7 + $0xe8] sm:$0xff] %vm1096_vm0, %v1272_v9 }
 0x487   : > { %v2169_v30 = vpop.eup %2168 }
 0x488   : > { %v2171_v51 = vpop.eup %2170  ;;  %v1761_v53 = vmul.f32 %v2169_v30, %v3179_v8 }
 0x489   : > { %v1765_v40 = vmul.f32 %v2171_v51, %v3181_v11  ;;  %v1708_v32 = vpop.xlane.xlu1 %1707  ;;  %v1702_v58 = vpop.xlane.xlu0 %1701 }
 0x48a   : > { %1962 = vst.msk [vmem:[%s3238_s7 + $0x10] sm:$0xff] %vm1096_vm0, %v1761_v53  ;;  %2172 = vrcp.f32 %v1708_v32  ;;  %v1714_v41 = vpop.xlane.xlu2 %1713 }
 0x48b   : > { %1966 = vst.msk [vmem:[%s3238_s7 + $0x50] sm:$0xff] %vm1096_vm0, %v1765_v40  ;;  %2174 = vrcp.f32 %v1714_v41 }
 0x48c   : > { %2176 = vrcp.f32 %v1702_v58 }
 0x490   : > { %v2173_v24 = vpop.eup %2172 }
 0x491   : > { %v2175_v60 = vpop.eup %2174  ;;  %v1764_v21 = vmul.f32 %v2173_v24, %v3192_v6  ;;  %v1717_v8 = vpop.xlane.xlu1 %1716 }
 0x492   : > { %v1729_v13 = vpop.xlane.xlu0 %1728  ;;  %v2177_v11 = vpop.eup %2176  ;;  %v1766_v35 = vmul.f32 %v2175_v60, %v3196_v1  ;;  %2178 = vrcp.f32 %v1717_v8 }
 0x493   : > { %v1723_v5 = vpop.xlane.xlu2 %1722  ;;  %1965 = vst.msk [vmem:[%s3238_s7 + $0x38] sm:$0xff] %vm1096_vm0, %v1764_v21  ;;  %v1762_v12 = vmul.f32 %v2177_v11, %v3190_v25 }
 0x494   : > { %2180 = vrcp.f32 %v1723_v5  ;;  %1967 = vst.msk [vmem:[%s3238_s7 + $0x58] sm:$0xff] %vm1096_vm0, %v1766_v35 }
 0x495   : > { %2182 = vrcp.f32 %v1729_v13  ;;  %1963 = vst.msk [vmem:[%s3238_s7 + $0x18] sm:$0xff] %vm1096_vm0, %v1762_v12 }
 0x498   : > { %v2179_v6 = vpop.eup %2178 }
 0x499   : > { %v1767_v7 = vmul.f32 %v2179_v6, %v3205_v37  ;;  %v1726_v1 = vpop.xlane.xlu1 %1725 }
 0x49a   : > { %v2181_v2 = vpop.eup %2180  ;;  %v1720_v46 = vpop.xlane.xlu0 %1719  ;;  %2184 = vrcp.f32 %v1726_v1 }
 0x49b   : > { %v2183_v59 = vpop.eup %2182  ;;  %v1769_v19 = vmul.f32 %v2181_v2, %v3211_v4  ;;  %v1732_v25 = vpop.xlane.xlu2 %1731  ;;  %1968 = vst.msk [vmem:[%s3238_s7 + $0x70] sm:$0xff] %vm1096_vm0, %v1767_v7  ;;  %2186 = vrcp.f32 %v1720_v46 }
 0x49c   : > { %v1771_v28 = vmul.f32 %v2183_v59, %v3207_v50  ;;  %2188 = vrcp.f32 %v1732_v25 }
 0x49d   : > { %1970 = vst.msk [vmem:[%s3238_s7 + $0x90] sm:$0xff] %vm1096_vm0, %v1769_v19 }
 0x49e   : > { %1972 = vst.msk [vmem:[%s3238_s7 + $0xb0] sm:$0xff] %vm1096_vm0, %v1771_v28 }
 0x4a0   : > { %v2185_v37 = vpop.eup %2184 }
 0x4a1   : > { %v2187_v62 = vpop.eup %2186  ;;  %v1770_v26 = vmul.f32 %v2185_v37, %v3220_v48  ;;  %v1735_v4 = vpop.xlane.xlu1 %1734 }
 0x4a2   : > { %v1738_v54 = vpop.xlane.xlu0 %1737  ;;  %v2189_v27 = vpop.eup %2188  ;;  %v1768_v50 = vmul.f32 %v2187_v62, %v3222_v20  ;;  %2190 = vrcp.f32 %v1735_v4 }
 0x4a3   : > { %1971 = vst.msk [vmem:[%s3238_s7 + $0x98] sm:$0xff] %vm1096_vm0, %v1770_v26  ;;  %v1772_v61 = vmul.f32 %v2189_v27, %v3226_v34  ;;  %2192 = vrcp.f32 %v1738_v54 }
 0x4a4   : > { %1969 = vst.msk [vmem:[%s3238_s7 + $0x78] sm:$0xff] %vm1096_vm0, %v1768_v50 }
 0x4a5   : > { %1973 = vst.msk [vmem:[%s3238_s7 + $0xb8] sm:$0xff] %vm1096_vm0, %v1772_v61 }
 0x4a8   : > { %v2191_v48 = vpop.eup %2190 }
 0x4a9   : > { %v2193_v10 = vpop.eup %2192  ;;  %v1773_v49 = vmul.f32 %v2191_v48, %v3236_v42  ;;  %v1741_v16 = vpop.xlane.xlu2 %1740 }
 0x4aa   : > { %v1774_v56 = vmul.f32 %v2193_v10, %v3242_v57  ;;  %2194 = vrcp.f32 %v1741_v16 }
 0x4ab   : > { %1974 = vst.msk [vmem:[%s3238_s7 + $0xd0] sm:$0xff] %vm1096_vm0, %v1773_v49 }
 0x4ac   : > { %1975 = vst.msk [vmem:[%s3238_s7 + $0xd8] sm:$0xff] %vm1096_vm0, %v1774_v56 }
 0x4b0   : > { %v2195_v20 = vpop.eup %2194  ;;  %v1744_v34 = vpop.xlane.xlu1 %1743 }
 0x4b1   : > { %v1775_v14 = vmul.f32 %v2195_v20, %v3252_v17  ;;  %2196 = vrcp.f32 %v1744_v34 }
 0x4b3   : > { %1976 = vst.msk [vmem:[%s3238_s7 + $0xf0] sm:$0xff] %vm1096_vm0, %v1775_v14 }
 0x4b7   : > { %v2197_v42 = vpop.eup %2196 }
 0x4b8   : > { %v1776_v57 = vmul.f32 %v2197_v42, %v3256_v29 }
 0x4ba   : > { %1977 = vst.msk [vmem:[%s3238_s7 + $0xf8] sm:$0xff] %vm1096_vm0, %v1776_v57 }
 0x4bb   : > { %2225 = shalt.err (!%p2222_p3)
}
 0x4bc   : > { %s2266_s30 = smov 128   ;;  %s2267_s6 = smov 8  }
 0x4bd   : > { %1988 = dma.vmem_to_hbm [thread:$0]  (%p2336_p5), %s1809_s12, 4096, %s1811_s13, %s1795_s22, %s2266_s30, %s2266_s30, %s2267_s6  }
 0x4be PF: > { %p1994_p4 = scmp.ge.s32.totalorder %s2260_s21, 2  ;;  %s1825_s7 = sand.u32 1, %s2248_s18  }
 0x4bf   : > { %s1826_s8 = scalar_lea.sflag [#allocation3], %s1825_s7 }
 0x4c0   : > { %p1991_p7 = pnand %p1994_p4, %p2340_p6 }
 0x4c2   : > { %p1992_p8 = pneg %p1991_p7 }
 0x4c4   : > { %2243 = dma.done.wait (%p1992_p8), %s1826_s8, 4096  }
 0x4c5   : > { %2245 = vsyncadd (%p1992_p8), %s1826_s8, 4294963200  ;;  %p15_p9 = scmp.ge.s32.totalorder %s2323_s24, 4   ;;  %s3404_s18 = smov %s2252_s19 }
 0x4c6   : > { %s3405_s19 = smov %s2256_s20  ;;  %s3406_s20 = smov %s2334_s27 }
 0x4c7   : > { %s3407_s21 = smov %s2323_s24  ;;  %17 = sbr.rel (!%p15_p9) target bundleno = 3 (0x3), region = 76 }
 0x4cc   :  { %1832 = vsyncpa [#allocation3], 1 }
 0x4cd   :  { %1834 = vsyncpa [#allocation3 + $0x1], 1 }

</bundles_post_ra>
